<compile_context>
chip_gen: v7x
topology: tpu7x:2x2x1
jax: 0.10.0
libtpu: 0.0.40
codegen_flags: <defaults>
</compile_context>

<pallas_src>
import functools

import jax
import jax.numpy as jnp
from jax.experimental import pallas as pl
from jax.experimental.pallas import tpu as pltpu

# --- model hyper-parameters (small, consistent with the module's forward) ---
D_MODEL = 32
NHEAD = 4
DIM_FF = 64
NUM_LAYERS = 2
SEQ = 8
BATCH = 2
LN_EPS = 1e-5


def _layer_norm(x, gamma, beta):
    mu = jnp.mean(x, axis=-1, keepdims=True)
    var = jnp.mean((x - mu) ** 2, axis=-1, keepdims=True)
    return (x - mu) * jax.lax.rsqrt(var + LN_EPS) * gamma + beta


def _encoder_stack_kernel(x_ref, wqkv_ref, wo_ref, w1_ref, w2_ref, vec_ref, out_ref,
                          *, nhead, num_layers, seq, batch):
    """Full TransformerEncoder (all layers, all batch elements) in one program.

    x_ref:    (B*S, E)   activations, batch folded into the row/sublane axis
    wqkv_ref: (L, E, 3E) packed in-projection weights, pre-transposed, bf16
    wo_ref:   (L, E, E)  out-projection weights, pre-transposed, bf16
    w1_ref:   (L, E, F)  FFN linear1 weights, pre-transposed, bf16
    w2_ref:   (L, F, E)  FFN linear2 weights, pre-transposed, bf16
    vec_ref:  (L, 8, W)  packed f32 rows: bqkv, bo, b1, b2, g1, beta1, g2, beta2
    """
    rows, e = x_ref.shape
    f = w1_ref.shape[-1]
    hd = e // nhead
    scale = 1.0 / jnp.sqrt(jnp.float32(hd))

    x = x_ref[...]                                   # (B*S, E) f32, resident in vregs
    for layer in range(num_layers):                  # static unroll: layers fused, no HBM trip
        wqkv = wqkv_ref[layer]                       # (E, 3E) bf16
        wo = wo_ref[layer]                           # (E, E)  bf16
        w1 = w1_ref[layer]                           # (E, F)  bf16
        w2 = w2_ref[layer]                           # (F, E)  bf16
        vec = vec_ref[layer]                         # (8, W)  f32

        # --- self-attention: one packed QKV projection for the whole slab ---
        qkv = jnp.dot(x.astype(jnp.bfloat16), wqkv,
                      preferred_element_type=jnp.float32) + vec[0:1, :3 * e]  # (B*S, 3E)

        # per-(batch, head) scores / PV products; head outputs land in their lane
        # slice of one context slab (single Wo matmul afterwards)
        ctx_rows = []
        for b in range(batch):                       # static unroll over tiny batch
            qkv_b = qkv[b * seq:(b + 1) * seq, :]    # (S, 3E) sublane-aligned slice
            head_outs = []
            for h in range(nhead):                   # static unroll over heads
                lo = h * hd
                qh = (qkv_b[:, lo:lo + hd] * scale).astype(jnp.bfloat16)
                kh = qkv_b[:, e + lo:e + lo + hd].astype(jnp.bfloat16)
                vh = qkv_b[:, 2 * e + lo:2 * e + lo + hd].astype(jnp.bfloat16)
                # q @ k^T expressed as a contraction (no explicit transpose op)
                sc = jax.lax.dot_general(qh, kh, (((1,), (1,)), ((), ())),
                                         preferred_element_type=jnp.float32)   # (S, S)
                sc = sc - jnp.max(sc, axis=-1, keepdims=True)
                p = jnp.exp(sc)
                p = p / jnp.sum(p, axis=-1, keepdims=True)                      # exact
                head_outs.append(jnp.dot(p.astype(jnp.bfloat16), vh,
                                         preferred_element_type=jnp.float32))   # (S, hd)
            ctx_rows.append(jnp.concatenate(head_outs, axis=1))                 # (S, E)
        ctx = jnp.concatenate(ctx_rows, axis=0)                                  # (B*S, E)

        # --- single output projection for all heads / batch elements ---
        attn = jnp.dot(ctx.astype(jnp.bfloat16), wo,
                       preferred_element_type=jnp.float32) + vec[1:2, :e]

        # --- residual + LayerNorm 1 (dropout = identity in eval) ---
        y = _layer_norm(x + attn, vec[4:5, :e], vec[5:6, :e])

        # --- feed-forward: linear1 -> ReLU -> linear2 on the full slab ---
        h1 = jnp.maximum(jnp.dot(y.astype(jnp.bfloat16), w1,
                                 preferred_element_type=jnp.float32) + vec[2:3, :f], 0.0)
        h2 = jnp.dot(h1.astype(jnp.bfloat16), w2,
                     preferred_element_type=jnp.float32) + vec[3:4, :e]

        # --- residual + LayerNorm 2 ---
        x = _layer_norm(y + h2, vec[6:7, :e], vec[7:8, :e])

    out_ref[...] = x                                 # single lane-dense store


def transformer_encoder_forward(src_sbe, packed_params, norm_params=None):
    """TransformerEncoder.forward: src (S, B, E) -> (S, B, E). masks are None."""
    # TODO(synk): src_mask / src_key_padding_mask support (module forward accepts
    # them but the reference call path here uses None).
    wqkv_all, wo_all, w1_all, w2_all, vec_all = packed_params
    s, b, e = src_sbe.shape
    num_layers = wqkv_all.shape[0]

    # (S, B, E) -> contiguous (B*S, E) slab (tiny XLA transpose outside the kernel)
    x2d = jnp.transpose(src_sbe, (1, 0, 2)).reshape(b * s, e)

    kernel = functools.partial(_encoder_stack_kernel, nhead=NHEAD,
                               num_layers=num_layers, seq=s, batch=b)

    out2d = pl.pallas_call(
        kernel,
        out_shape=jax.ShapeDtypeStruct((b * s, e), jnp.float32),
        grid=(1,),
        in_specs=[
            pl.BlockSpec((b * s, e), lambda i: (0, 0)),            # activations (B*S, E)
            pl.BlockSpec(wqkv_all.shape, lambda i: (0, 0, 0)),     # packed QKV weights (L,E,3E)
            pl.BlockSpec(wo_all.shape, lambda i: (0, 0, 0)),       # out-proj weights  (L,E,E)
            pl.BlockSpec(w1_all.shape, lambda i: (0, 0, 0)),       # FFN w1            (L,E,F)
            pl.BlockSpec(w2_all.shape, lambda i: (0, 0, 0)),       # FFN w2            (L,F,E)
            pl.BlockSpec(vec_all.shape, lambda i: (0, 0, 0)),      # packed bias/LN    (L,8,W)
        ],
        out_specs=pl.BlockSpec((b * s, e), lambda i: (0, 0)),
    )(x2d, wqkv_all, wo_all, w1_all, w2_all, vec_all)

    out = out2d.reshape(b, s, e).transpose(1, 0, 2)                # back to (S, B, E)
    if norm_params is not None:                      # optional final norm (None by default)
        out = _layer_norm(out, norm_params[0], norm_params[1])
    return out


def init_layer_params(key, d_model, nhead, dim_ff):
    """Deterministic synthetic parameters matching nn.TransformerEncoderLayer shapes."""
    ks = jax.random.split(key, 8)
    return {
        # MultiheadAttention packed in-projection (3E, E) + bias (3E,)  (PyTorch layout)
        "wqkv": 0.02 * jax.random.normal(ks[0], (3 * d_model, d_model), jnp.float32),
        "bqkv": 0.02 * jax.random.normal(ks[1], (3 * d_model,), jnp.float32),
        "wo": 0.02 * jax.random.normal(ks[2], (d_model, d_model), jnp.float32),
        "bo": 0.02 * jax.random.normal(ks[3], (d_model,), jnp.float32),
        # feed-forward
        "w1": 0.02 * jax.random.normal(ks[4], (dim_ff, d_model), jnp.float32),
        "b1": 0.02 * jax.random.normal(ks[5], (dim_ff,), jnp.float32),
        "w2": 0.02 * jax.random.normal(ks[6], (d_model, dim_ff), jnp.float32),
        "b2": 0.02 * jax.random.normal(ks[7], (d_model,), jnp.float32),
        # layer norms
        "g1": jnp.ones((d_model,), jnp.float32),
        "bta1": jnp.zeros((d_model,), jnp.float32),
        "g2": jnp.ones((d_model,), jnp.float32),
        "bta2": jnp.zeros((d_model,), jnp.float32),
    }


def pack_params(layer_params, d_model, dim_ff):
    """Host-side packing: pre-transpose weights (bf16 MXU operands), stack layers,
    pack the 8 small bias/LN vectors per layer into one f32 (L, 8, W) array."""
    width = max(3 * d_model, dim_ff)

    def vrow(v):
        return jnp.pad(v, (0, width - v.shape[0]))

    wqkv_all = jnp.stack([p["wqkv"].T for p in layer_params]).astype(jnp.bfloat16)  # (L,E,3E)
    wo_all = jnp.stack([p["wo"].T for p in layer_params]).astype(jnp.bfloat16)      # (L,E,E)
    w1_all = jnp.stack([p["w1"].T for p in layer_params]).astype(jnp.bfloat16)      # (L,E,F)
    w2_all = jnp.stack([p["w2"].T for p in layer_params]).astype(jnp.bfloat16)      # (L,F,E)
    vec_all = jnp.stack([
        jnp.stack([vrow(p["bqkv"]), vrow(p["bo"]), vrow(p["b1"]), vrow(p["b2"]),
                   vrow(p["g1"]), vrow(p["bta1"]), vrow(p["g2"]), vrow(p["bta2"])])
        for p in layer_params]).astype(jnp.float32)                                  # (L,8,W)
    return wqkv_all, wo_all, w1_all, w2_all, vec_all


if __name__ == "__main__":
    root = jax.random.PRNGKey(0)
    k_src, k_params = jax.random.split(root)

    layer_keys = jax.random.split(k_params, NUM_LAYERS)
    layer_params = [init_layer_params(k, D_MODEL, NHEAD, DIM_FF) for k in layer_keys]
    packed = pack_params(layer_params, D_MODEL, DIM_FF)

    # src in PyTorch convention (S, B, E)
    src = jax.random.normal(k_src, (SEQ, BATCH, D_MODEL), jnp.float32)

    out = transformer_encoder_forward(src, packed, norm_params=None)
    out = jax.block_until_ready(out)
    assert out.shape == (SEQ, BATCH, D_MODEL)
    assert out.dtype == jnp.float32
    print("KERNEL_OK")
</pallas_src>

<mosaic_0001>
module attributes {stable_mosaic.version = 11 : i64} {
  func.func @_encoder_stack_kernel(%arg0: i32, %arg1: memref<16x32xf32, #tpu.memory_space<vmem>>, %arg2: memref<2x32x96xbf16, #tpu.memory_space<vmem>>, %arg3: memref<2x32x32xbf16, #tpu.memory_space<vmem>>, %arg4: memref<2x32x64xbf16, #tpu.memory_space<vmem>>, %arg5: memref<2x64x32xbf16, #tpu.memory_space<vmem>>, %arg6: memref<2x8x96xf32, #tpu.memory_space<vmem>>, %arg7: memref<16x32xf32, #tpu.memory_space<vmem>>) attributes {dimension_semantics = [#tpu.dimension_semantics<arbitrary>], iteration_bounds = array<i64: 1>, scalar_prefetch = 0 : i64, scratch_operands = 0 : i64, tpu.core_type = #tpu.core_type<tc>, window_params = [{pipeline_mode = #tpu.pipeline_mode<synchronous>, transform_indices = @transform_0, window_bounds = array<i64: 16, 32>}, {pipeline_mode = #tpu.pipeline_mode<synchronous>, transform_indices = @transform_1, window_bounds = array<i64: 2, 32, 96>}, {pipeline_mode = #tpu.pipeline_mode<synchronous>, transform_indices = @transform_2, window_bounds = array<i64: 2, 32, 32>}, {pipeline_mode = #tpu.pipeline_mode<synchronous>, transform_indices = @transform_3, window_bounds = array<i64: 2, 32, 64>}, {pipeline_mode = #tpu.pipeline_mode<synchronous>, transform_indices = @transform_4, window_bounds = array<i64: 2, 64, 32>}, {pipeline_mode = #tpu.pipeline_mode<synchronous>, transform_indices = @transform_5, window_bounds = array<i64: 2, 8, 96>}, {pipeline_mode = #tpu.pipeline_mode<synchronous>, transform_indices = @transform_6, window_bounds = array<i64: 16, 32>}]} {
    %cst = arith.constant 8.000000e+00 : f32
    %0 = math.sqrt %cst : f32
    %cst_0 = arith.constant 1.000000e+00 : f32
    %1 = arith.divf %cst_0, %0 : f32
    %c0 = arith.constant 0 : index
    %c0_1 = arith.constant 0 : index
    %2 = vector.load %arg1[%c0, %c0_1] : memref<16x32xf32, #tpu.memory_space<vmem>>, vector<16x32xf32>
    %c0_2 = arith.constant 0 : index
    %c0_3 = arith.constant 0 : index
    %c0_4 = arith.constant 0 : index
    %3 = vector.load %arg2[%c0_2, %c0_3, %c0_4] : memref<2x32x96xbf16, #tpu.memory_space<vmem>>, vector<1x32x96xbf16>
    %4 = vector.shape_cast %3 : vector<1x32x96xbf16> to vector<32x96xbf16>
    %c0_5 = arith.constant 0 : index
    %c0_6 = arith.constant 0 : index
    %c0_7 = arith.constant 0 : index
    %5 = vector.load %arg3[%c0_5, %c0_6, %c0_7] : memref<2x32x32xbf16, #tpu.memory_space<vmem>>, vector<1x32x32xbf16>
    %6 = vector.shape_cast %5 : vector<1x32x32xbf16> to vector<32x32xbf16>
    %c0_8 = arith.constant 0 : index
    %c0_9 = arith.constant 0 : index
    %c0_10 = arith.constant 0 : index
    %7 = vector.load %arg4[%c0_8, %c0_9, %c0_10] : memref<2x32x64xbf16, #tpu.memory_space<vmem>>, vector<1x32x64xbf16>
    %8 = vector.shape_cast %7 : vector<1x32x64xbf16> to vector<32x64xbf16>
    %c0_11 = arith.constant 0 : index
    %c0_12 = arith.constant 0 : index
    %c0_13 = arith.constant 0 : index
    %9 = vector.load %arg5[%c0_11, %c0_12, %c0_13] : memref<2x64x32xbf16, #tpu.memory_space<vmem>>, vector<1x64x32xbf16>
    %10 = vector.shape_cast %9 : vector<1x64x32xbf16> to vector<64x32xbf16>
    %c0_14 = arith.constant 0 : index
    %c0_15 = arith.constant 0 : index
    %c0_16 = arith.constant 0 : index
    %11 = vector.load %arg6[%c0_14, %c0_15, %c0_16] : memref<2x8x96xf32, #tpu.memory_space<vmem>>, vector<1x8x96xf32>
    %12 = vector.shape_cast %11 : vector<1x8x96xf32> to vector<8x96xf32>
    %13 = arith.truncf %2 : vector<16x32xf32> to vector<16x32xbf16>
    %cst_17 = arith.constant dense<0.000000e+00> : vector<16x96xf32>
    %14 = tpu.matmul %13, %4, %cst_17 {dimension_numbers = #tpu.dot_dimension_numbers<[1], [0], [0], [1], [0, 0, 1, 1], [], []>} : vector<16x32xbf16>, vector<32x96xbf16>, vector<16x96xf32> -> vector<16x96xf32>
    %15 = vector.extract_strided_slice %12 {offsets = [0, 0], sizes = [1, 96], strides = [1, 1]} : vector<8x96xf32> to vector<1x96xf32>
    %16 = vector.broadcast %15 : vector<1x96xf32> to vector<16x96xf32>
    %17 = arith.addf %14, %16 : vector<16x96xf32>
    %18 = vector.extract_strided_slice %17 {offsets = [0, 0], sizes = [8, 96], strides = [1, 1]} : vector<16x96xf32> to vector<8x96xf32>
    %19 = vector.extract_strided_slice %18 {offsets = [0, 0], sizes = [8, 8], strides = [1, 1]} : vector<8x96xf32> to vector<8x8xf32>
    %20 = vector.broadcast %1 : f32 to vector<8x8xf32>
    %21 = arith.mulf %19, %20 : vector<8x8xf32>
    %22 = arith.truncf %21 : vector<8x8xf32> to vector<8x8xbf16>
    %23 = vector.extract_strided_slice %18 {offsets = [0, 32], sizes = [8, 8], strides = [1, 1]} : vector<8x96xf32> to vector<8x8xf32>
    %24 = arith.truncf %23 : vector<8x8xf32> to vector<8x8xbf16>
    %25 = vector.extract_strided_slice %18 {offsets = [0, 64], sizes = [8, 8], strides = [1, 1]} : vector<8x96xf32> to vector<8x8xf32>
    %26 = arith.truncf %25 : vector<8x8xf32> to vector<8x8xbf16>
    %cst_18 = arith.constant dense<0.000000e+00> : vector<8x8xf32>
    %27 = tpu.matmul %22, %24, %cst_18 {dimension_numbers = #tpu.dot_dimension_numbers<[1], [1], [0], [0], [0, 0, 1, 0], [], []>} : vector<8x8xbf16>, vector<8x8xbf16>, vector<8x8xf32> -> vector<8x8xf32>
    %cst_19 = arith.constant dense<0xFF800000> : vector<8xf32>
    %28 = vector.multi_reduction <maximumf>, %27, %cst_19 [1] : vector<8x8xf32> to vector<8xf32>
    %29 = vector.shape_cast %28 : vector<8xf32> to vector<8x1xf32>
    %30 = vector.broadcast %29 : vector<8x1xf32> to vector<8x8xf32>
    %31 = arith.subf %27, %30 : vector<8x8xf32>
    %32 = math.exp %31 : vector<8x8xf32>
    %cst_20 = arith.constant dense<0.000000e+00> : vector<8xf32>
    %33 = vector.multi_reduction <add>, %32, %cst_20 [1] : vector<8x8xf32> to vector<8xf32>
    %34 = vector.shape_cast %33 : vector<8xf32> to vector<8x1xf32>
    %35 = vector.broadcast %34 : vector<8x1xf32> to vector<8x8xf32>
    %36 = arith.divf %32, %35 : vector<8x8xf32>
    %37 = arith.truncf %36 : vector<8x8xf32> to vector<8x8xbf16>
    %cst_21 = arith.constant dense<0.000000e+00> : vector<8x8xf32>
    %38 = tpu.matmul %37, %26, %cst_21 {dimension_numbers = #tpu.dot_dimension_numbers<[1], [0], [0], [1], [0, 0, 1, 1], [], []>} : vector<8x8xbf16>, vector<8x8xbf16>, vector<8x8xf32> -> vector<8x8xf32>
    %39 = vector.extract_strided_slice %18 {offsets = [0, 8], sizes = [8, 8], strides = [1, 1]} : vector<8x96xf32> to vector<8x8xf32>
    %40 = vector.broadcast %1 : f32 to vector<8x8xf32>
    %41 = arith.mulf %39, %40 : vector<8x8xf32>
    %42 = arith.truncf %41 : vector<8x8xf32> to vector<8x8xbf16>
    %43 = vector.extract_strided_slice %18 {offsets = [0, 40], sizes = [8, 8], strides = [1, 1]} : vector<8x96xf32> to vector<8x8xf32>
    %44 = arith.truncf %43 : vector<8x8xf32> to vector<8x8xbf16>
    %45 = vector.extract_strided_slice %18 {offsets = [0, 72], sizes = [8, 8], strides = [1, 1]} : vector<8x96xf32> to vector<8x8xf32>
    %46 = arith.truncf %45 : vector<8x8xf32> to vector<8x8xbf16>
    %cst_22 = arith.constant dense<0.000000e+00> : vector<8x8xf32>
    %47 = tpu.matmul %42, %44, %cst_22 {dimension_numbers = #tpu.dot_dimension_numbers<[1], [1], [0], [0], [0, 0, 1, 0], [], []>} : vector<8x8xbf16>, vector<8x8xbf16>, vector<8x8xf32> -> vector<8x8xf32>
    %cst_23 = arith.constant dense<0xFF800000> : vector<8xf32>
    %48 = vector.multi_reduction <maximumf>, %47, %cst_23 [1] : vector<8x8xf32> to vector<8xf32>
    %49 = vector.shape_cast %48 : vector<8xf32> to vector<8x1xf32>
    %50 = vector.broadcast %49 : vector<8x1xf32> to vector<8x8xf32>
    %51 = arith.subf %47, %50 : vector<8x8xf32>
    %52 = math.exp %51 : vector<8x8xf32>
    %cst_24 = arith.constant dense<0.000000e+00> : vector<8xf32>
    %53 = vector.multi_reduction <add>, %52, %cst_24 [1] : vector<8x8xf32> to vector<8xf32>
    %54 = vector.shape_cast %53 : vector<8xf32> to vector<8x1xf32>
    %55 = vector.broadcast %54 : vector<8x1xf32> to vector<8x8xf32>
    %56 = arith.divf %52, %55 : vector<8x8xf32>
    %57 = arith.truncf %56 : vector<8x8xf32> to vector<8x8xbf16>
    %cst_25 = arith.constant dense<0.000000e+00> : vector<8x8xf32>
    %58 = tpu.matmul %57, %46, %cst_25 {dimension_numbers = #tpu.dot_dimension_numbers<[1], [0], [0], [1], [0, 0, 1, 1], [], []>} : vector<8x8xbf16>, vector<8x8xbf16>, vector<8x8xf32> -> vector<8x8xf32>
    %59 = vector.extract_strided_slice %18 {offsets = [0, 16], sizes = [8, 8], strides = [1, 1]} : vector<8x96xf32> to vector<8x8xf32>
    %60 = vector.broadcast %1 : f32 to vector<8x8xf32>
    %61 = arith.mulf %59, %60 : vector<8x8xf32>
    %62 = arith.truncf %61 : vector<8x8xf32> to vector<8x8xbf16>
    %63 = vector.extract_strided_slice %18 {offsets = [0, 48], sizes = [8, 8], strides = [1, 1]} : vector<8x96xf32> to vector<8x8xf32>
    %64 = arith.truncf %63 : vector<8x8xf32> to vector<8x8xbf16>
    %65 = vector.extract_strided_slice %18 {offsets = [0, 80], sizes = [8, 8], strides = [1, 1]} : vector<8x96xf32> to vector<8x8xf32>
    %66 = arith.truncf %65 : vector<8x8xf32> to vector<8x8xbf16>
    %cst_26 = arith.constant dense<0.000000e+00> : vector<8x8xf32>
    %67 = tpu.matmul %62, %64, %cst_26 {dimension_numbers = #tpu.dot_dimension_numbers<[1], [1], [0], [0], [0, 0, 1, 0], [], []>} : vector<8x8xbf16>, vector<8x8xbf16>, vector<8x8xf32> -> vector<8x8xf32>
    %cst_27 = arith.constant dense<0xFF800000> : vector<8xf32>
    %68 = vector.multi_reduction <maximumf>, %67, %cst_27 [1] : vector<8x8xf32> to vector<8xf32>
    %69 = vector.shape_cast %68 : vector<8xf32> to vector<8x1xf32>
    %70 = vector.broadcast %69 : vector<8x1xf32> to vector<8x8xf32>
    %71 = arith.subf %67, %70 : vector<8x8xf32>
    %72 = math.exp %71 : vector<8x8xf32>
    %cst_28 = arith.constant dense<0.000000e+00> : vector<8xf32>
    %73 = vector.multi_reduction <add>, %72, %cst_28 [1] : vector<8x8xf32> to vector<8xf32>
    %74 = vector.shape_cast %73 : vector<8xf32> to vector<8x1xf32>
    %75 = vector.broadcast %74 : vector<8x1xf32> to vector<8x8xf32>
    %76 = arith.divf %72, %75 : vector<8x8xf32>
    %77 = arith.truncf %76 : vector<8x8xf32> to vector<8x8xbf16>
    %cst_29 = arith.constant dense<0.000000e+00> : vector<8x8xf32>
    %78 = tpu.matmul %77, %66, %cst_29 {dimension_numbers = #tpu.dot_dimension_numbers<[1], [0], [0], [1], [0, 0, 1, 1], [], []>} : vector<8x8xbf16>, vector<8x8xbf16>, vector<8x8xf32> -> vector<8x8xf32>
    %79 = vector.extract_strided_slice %18 {offsets = [0, 24], sizes = [8, 8], strides = [1, 1]} : vector<8x96xf32> to vector<8x8xf32>
    %80 = vector.broadcast %1 : f32 to vector<8x8xf32>
    %81 = arith.mulf %79, %80 : vector<8x8xf32>
    %82 = arith.truncf %81 : vector<8x8xf32> to vector<8x8xbf16>
    %83 = vector.extract_strided_slice %18 {offsets = [0, 56], sizes = [8, 8], strides = [1, 1]} : vector<8x96xf32> to vector<8x8xf32>
    %84 = arith.truncf %83 : vector<8x8xf32> to vector<8x8xbf16>
    %85 = vector.extract_strided_slice %18 {offsets = [0, 88], sizes = [8, 8], strides = [1, 1]} : vector<8x96xf32> to vector<8x8xf32>
    %86 = arith.truncf %85 : vector<8x8xf32> to vector<8x8xbf16>
    %cst_30 = arith.constant dense<0.000000e+00> : vector<8x8xf32>
    %87 = tpu.matmul %82, %84, %cst_30 {dimension_numbers = #tpu.dot_dimension_numbers<[1], [1], [0], [0], [0, 0, 1, 0], [], []>} : vector<8x8xbf16>, vector<8x8xbf16>, vector<8x8xf32> -> vector<8x8xf32>
    %cst_31 = arith.constant dense<0xFF800000> : vector<8xf32>
    %88 = vector.multi_reduction <maximumf>, %87, %cst_31 [1] : vector<8x8xf32> to vector<8xf32>
    %89 = vector.shape_cast %88 : vector<8xf32> to vector<8x1xf32>
    %90 = vector.broadcast %89 : vector<8x1xf32> to vector<8x8xf32>
    %91 = arith.subf %87, %90 : vector<8x8xf32>
    %92 = math.exp %91 : vector<8x8xf32>
    %cst_32 = arith.constant dense<0.000000e+00> : vector<8xf32>
    %93 = vector.multi_reduction <add>, %92, %cst_32 [1] : vector<8x8xf32> to vector<8xf32>
    %94 = vector.shape_cast %93 : vector<8xf32> to vector<8x1xf32>
    %95 = vector.broadcast %94 : vector<8x1xf32> to vector<8x8xf32>
    %96 = arith.divf %92, %95 : vector<8x8xf32>
    %97 = arith.truncf %96 : vector<8x8xf32> to vector<8x8xbf16>
    %cst_33 = arith.constant dense<0.000000e+00> : vector<8x8xf32>
    %98 = tpu.matmul %97, %86, %cst_33 {dimension_numbers = #tpu.dot_dimension_numbers<[1], [0], [0], [1], [0, 0, 1, 1], [], []>} : vector<8x8xbf16>, vector<8x8xbf16>, vector<8x8xf32> -> vector<8x8xf32>
    %99 = tpu.concatenate %38, %58, %78, %98 in 1 : vector<8x8xf32>, vector<8x8xf32>, vector<8x8xf32>, vector<8x8xf32> -> vector<8x32xf32>
    %100 = vector.extract_strided_slice %17 {offsets = [8, 0], sizes = [8, 96], strides = [1, 1]} : vector<16x96xf32> to vector<8x96xf32>
    %101 = vector.extract_strided_slice %100 {offsets = [0, 0], sizes = [8, 8], strides = [1, 1]} : vector<8x96xf32> to vector<8x8xf32>
    %102 = vector.broadcast %1 : f32 to vector<8x8xf32>
    %103 = arith.mulf %101, %102 : vector<8x8xf32>
    %104 = arith.truncf %103 : vector<8x8xf32> to vector<8x8xbf16>
    %105 = vector.extract_strided_slice %100 {offsets = [0, 32], sizes = [8, 8], strides = [1, 1]} : vector<8x96xf32> to vector<8x8xf32>
    %106 = arith.truncf %105 : vector<8x8xf32> to vector<8x8xbf16>
    %107 = vector.extract_strided_slice %100 {offsets = [0, 64], sizes = [8, 8], strides = [1, 1]} : vector<8x96xf32> to vector<8x8xf32>
    %108 = arith.truncf %107 : vector<8x8xf32> to vector<8x8xbf16>
    %cst_34 = arith.constant dense<0.000000e+00> : vector<8x8xf32>
    %109 = tpu.matmul %104, %106, %cst_34 {dimension_numbers = #tpu.dot_dimension_numbers<[1], [1], [0], [0], [0, 0, 1, 0], [], []>} : vector<8x8xbf16>, vector<8x8xbf16>, vector<8x8xf32> -> vector<8x8xf32>
    %cst_35 = arith.constant dense<0xFF800000> : vector<8xf32>
    %110 = vector.multi_reduction <maximumf>, %109, %cst_35 [1] : vector<8x8xf32> to vector<8xf32>
    %111 = vector.shape_cast %110 : vector<8xf32> to vector<8x1xf32>
    %112 = vector.broadcast %111 : vector<8x1xf32> to vector<8x8xf32>
    %113 = arith.subf %109, %112 : vector<8x8xf32>
    %114 = math.exp %113 : vector<8x8xf32>
    %cst_36 = arith.constant dense<0.000000e+00> : vector<8xf32>
    %115 = vector.multi_reduction <add>, %114, %cst_36 [1] : vector<8x8xf32> to vector<8xf32>
    %116 = vector.shape_cast %115 : vector<8xf32> to vector<8x1xf32>
    %117 = vector.broadcast %116 : vector<8x1xf32> to vector<8x8xf32>
    %118 = arith.divf %114, %117 : vector<8x8xf32>
    %119 = arith.truncf %118 : vector<8x8xf32> to vector<8x8xbf16>
    %cst_37 = arith.constant dense<0.000000e+00> : vector<8x8xf32>
    %120 = tpu.matmul %119, %108, %cst_37 {dimension_numbers = #tpu.dot_dimension_numbers<[1], [0], [0], [1], [0, 0, 1, 1], [], []>} : vector<8x8xbf16>, vector<8x8xbf16>, vector<8x8xf32> -> vector<8x8xf32>
    %121 = vector.extract_strided_slice %100 {offsets = [0, 8], sizes = [8, 8], strides = [1, 1]} : vector<8x96xf32> to vector<8x8xf32>
    %122 = vector.broadcast %1 : f32 to vector<8x8xf32>
    %123 = arith.mulf %121, %122 : vector<8x8xf32>
    %124 = arith.truncf %123 : vector<8x8xf32> to vector<8x8xbf16>
    %125 = vector.extract_strided_slice %100 {offsets = [0, 40], sizes = [8, 8], strides = [1, 1]} : vector<8x96xf32> to vector<8x8xf32>
    %126 = arith.truncf %125 : vector<8x8xf32> to vector<8x8xbf16>
    %127 = vector.extract_strided_slice %100 {offsets = [0, 72], sizes = [8, 8], strides = [1, 1]} : vector<8x96xf32> to vector<8x8xf32>
    %128 = arith.truncf %127 : vector<8x8xf32> to vector<8x8xbf16>
    %cst_38 = arith.constant dense<0.000000e+00> : vector<8x8xf32>
    %129 = tpu.matmul %124, %126, %cst_38 {dimension_numbers = #tpu.dot_dimension_numbers<[1], [1], [0], [0], [0, 0, 1, 0], [], []>} : vector<8x8xbf16>, vector<8x8xbf16>, vector<8x8xf32> -> vector<8x8xf32>
    %cst_39 = arith.constant dense<0xFF800000> : vector<8xf32>
    %130 = vector.multi_reduction <maximumf>, %129, %cst_39 [1] : vector<8x8xf32> to vector<8xf32>
    %131 = vector.shape_cast %130 : vector<8xf32> to vector<8x1xf32>
    %132 = vector.broadcast %131 : vector<8x1xf32> to vector<8x8xf32>
    %133 = arith.subf %129, %132 : vector<8x8xf32>
    %134 = math.exp %133 : vector<8x8xf32>
    %cst_40 = arith.constant dense<0.000000e+00> : vector<8xf32>
    %135 = vector.multi_reduction <add>, %134, %cst_40 [1] : vector<8x8xf32> to vector<8xf32>
    %136 = vector.shape_cast %135 : vector<8xf32> to vector<8x1xf32>
    %137 = vector.broadcast %136 : vector<8x1xf32> to vector<8x8xf32>
    %138 = arith.divf %134, %137 : vector<8x8xf32>
    %139 = arith.truncf %138 : vector<8x8xf32> to vector<8x8xbf16>
    %cst_41 = arith.constant dense<0.000000e+00> : vector<8x8xf32>
    %140 = tpu.matmul %139, %128, %cst_41 {dimension_numbers = #tpu.dot_dimension_numbers<[1], [0], [0], [1], [0, 0, 1, 1], [], []>} : vector<8x8xbf16>, vector<8x8xbf16>, vector<8x8xf32> -> vector<8x8xf32>
    %141 = vector.extract_strided_slice %100 {offsets = [0, 16], sizes = [8, 8], strides = [1, 1]} : vector<8x96xf32> to vector<8x8xf32>
    %142 = vector.broadcast %1 : f32 to vector<8x8xf32>
    %143 = arith.mulf %141, %142 : vector<8x8xf32>
    %144 = arith.truncf %143 : vector<8x8xf32> to vector<8x8xbf16>
    %145 = vector.extract_strided_slice %100 {offsets = [0, 48], sizes = [8, 8], strides = [1, 1]} : vector<8x96xf32> to vector<8x8xf32>
    %146 = arith.truncf %145 : vector<8x8xf32> to vector<8x8xbf16>
    %147 = vector.extract_strided_slice %100 {offsets = [0, 80], sizes = [8, 8], strides = [1, 1]} : vector<8x96xf32> to vector<8x8xf32>
    %148 = arith.truncf %147 : vector<8x8xf32> to vector<8x8xbf16>
    %cst_42 = arith.constant dense<0.000000e+00> : vector<8x8xf32>
    %149 = tpu.matmul %144, %146, %cst_42 {dimension_numbers = #tpu.dot_dimension_numbers<[1], [1], [0], [0], [0, 0, 1, 0], [], []>} : vector<8x8xbf16>, vector<8x8xbf16>, vector<8x8xf32> -> vector<8x8xf32>
    %cst_43 = arith.constant dense<0xFF800000> : vector<8xf32>
    %150 = vector.multi_reduction <maximumf>, %149, %cst_43 [1] : vector<8x8xf32> to vector<8xf32>
    %151 = vector.shape_cast %150 : vector<8xf32> to vector<8x1xf32>
    %152 = vector.broadcast %151 : vector<8x1xf32> to vector<8x8xf32>
    %153 = arith.subf %149, %152 : vector<8x8xf32>
    %154 = math.exp %153 : vector<8x8xf32>
    %cst_44 = arith.constant dense<0.000000e+00> : vector<8xf32>
    %155 = vector.multi_reduction <add>, %154, %cst_44 [1] : vector<8x8xf32> to vector<8xf32>
    %156 = vector.shape_cast %155 : vector<8xf32> to vector<8x1xf32>
    %157 = vector.broadcast %156 : vector<8x1xf32> to vector<8x8xf32>
    %158 = arith.divf %154, %157 : vector<8x8xf32>
    %159 = arith.truncf %158 : vector<8x8xf32> to vector<8x8xbf16>
    %cst_45 = arith.constant dense<0.000000e+00> : vector<8x8xf32>
    %160 = tpu.matmul %159, %148, %cst_45 {dimension_numbers = #tpu.dot_dimension_numbers<[1], [0], [0], [1], [0, 0, 1, 1], [], []>} : vector<8x8xbf16>, vector<8x8xbf16>, vector<8x8xf32> -> vector<8x8xf32>
    %161 = vector.extract_strided_slice %100 {offsets = [0, 24], sizes = [8, 8], strides = [1, 1]} : vector<8x96xf32> to vector<8x8xf32>
    %162 = vector.broadcast %1 : f32 to vector<8x8xf32>
    %163 = arith.mulf %161, %162 : vector<8x8xf32>
    %164 = arith.truncf %163 : vector<8x8xf32> to vector<8x8xbf16>
    %165 = vector.extract_strided_slice %100 {offsets = [0, 56], sizes = [8, 8], strides = [1, 1]} : vector<8x96xf32> to vector<8x8xf32>
    %166 = arith.truncf %165 : vector<8x8xf32> to vector<8x8xbf16>
    %167 = vector.extract_strided_slice %100 {offsets = [0, 88], sizes = [8, 8], strides = [1, 1]} : vector<8x96xf32> to vector<8x8xf32>
    %168 = arith.truncf %167 : vector<8x8xf32> to vector<8x8xbf16>
    %cst_46 = arith.constant dense<0.000000e+00> : vector<8x8xf32>
    %169 = tpu.matmul %164, %166, %cst_46 {dimension_numbers = #tpu.dot_dimension_numbers<[1], [1], [0], [0], [0, 0, 1, 0], [], []>} : vector<8x8xbf16>, vector<8x8xbf16>, vector<8x8xf32> -> vector<8x8xf32>
    %cst_47 = arith.constant dense<0xFF800000> : vector<8xf32>
    %170 = vector.multi_reduction <maximumf>, %169, %cst_47 [1] : vector<8x8xf32> to vector<8xf32>
    %171 = vector.shape_cast %170 : vector<8xf32> to vector<8x1xf32>
    %172 = vector.broadcast %171 : vector<8x1xf32> to vector<8x8xf32>
    %173 = arith.subf %169, %172 : vector<8x8xf32>
    %174 = math.exp %173 : vector<8x8xf32>
    %cst_48 = arith.constant dense<0.000000e+00> : vector<8xf32>
    %175 = vector.multi_reduction <add>, %174, %cst_48 [1] : vector<8x8xf32> to vector<8xf32>
    %176 = vector.shape_cast %175 : vector<8xf32> to vector<8x1xf32>
    %177 = vector.broadcast %176 : vector<8x1xf32> to vector<8x8xf32>
    %178 = arith.divf %174, %177 : vector<8x8xf32>
    %179 = arith.truncf %178 : vector<8x8xf32> to vector<8x8xbf16>
    %cst_49 = arith.constant dense<0.000000e+00> : vector<8x8xf32>
    %180 = tpu.matmul %179, %168, %cst_49 {dimension_numbers = #tpu.dot_dimension_numbers<[1], [0], [0], [1], [0, 0, 1, 1], [], []>} : vector<8x8xbf16>, vector<8x8xbf16>, vector<8x8xf32> -> vector<8x8xf32>
    %181 = tpu.concatenate %120, %140, %160, %180 in 1 : vector<8x8xf32>, vector<8x8xf32>, vector<8x8xf32>, vector<8x8xf32> -> vector<8x32xf32>
    %182 = tpu.concatenate %99, %181 in 0 : vector<8x32xf32>, vector<8x32xf32> -> vector<16x32xf32>
    %183 = arith.truncf %182 : vector<16x32xf32> to vector<16x32xbf16>
    %cst_50 = arith.constant dense<0.000000e+00> : vector<16x32xf32>
    %184 = tpu.matmul %183, %6, %cst_50 {dimension_numbers = #tpu.dot_dimension_numbers<[1], [0], [0], [1], [0, 0, 1, 1], [], []>} : vector<16x32xbf16>, vector<32x32xbf16>, vector<16x32xf32> -> vector<16x32xf32>
    %185 = vector.extract_strided_slice %12 {offsets = [1, 0], sizes = [1, 32], strides = [1, 1]} : vector<8x96xf32> to vector<1x32xf32>
    %186 = vector.broadcast %185 : vector<1x32xf32> to vector<16x32xf32>
    %187 = arith.addf %184, %186 : vector<16x32xf32>
    %188 = arith.addf %2, %187 : vector<16x32xf32>
    %189 = vector.extract_strided_slice %12 {offsets = [4, 0], sizes = [1, 32], strides = [1, 1]} : vector<8x96xf32> to vector<1x32xf32>
    %190 = vector.extract_strided_slice %12 {offsets = [5, 0], sizes = [1, 32], strides = [1, 1]} : vector<8x96xf32> to vector<1x32xf32>
    %cst_51 = arith.constant dense<0.000000e+00> : vector<16xf32>
    %191 = vector.multi_reduction <add>, %188, %cst_51 [1] : vector<16x32xf32> to vector<16xf32>
    %192 = vector.shape_cast %191 : vector<16xf32> to vector<16x1xf32>
    %cst_52 = arith.constant 3.200000e+01 : f32
    %193 = vector.broadcast %cst_52 : f32 to vector<16x1xf32>
    %194 = arith.divf %192, %193 : vector<16x1xf32>
    %195 = vector.broadcast %194 : vector<16x1xf32> to vector<16x32xf32>
    %196 = arith.subf %188, %195 : vector<16x32xf32>
    %197 = arith.mulf %196, %196 : vector<16x32xf32>
    %cst_53 = arith.constant dense<0.000000e+00> : vector<16xf32>
    %198 = vector.multi_reduction <add>, %197, %cst_53 [1] : vector<16x32xf32> to vector<16xf32>
    %199 = vector.shape_cast %198 : vector<16xf32> to vector<16x1xf32>
    %cst_54 = arith.constant 3.200000e+01 : f32
    %200 = vector.broadcast %cst_54 : f32 to vector<16x1xf32>
    %201 = arith.divf %199, %200 : vector<16x1xf32>
    %202 = vector.broadcast %194 : vector<16x1xf32> to vector<16x32xf32>
    %203 = arith.subf %188, %202 : vector<16x32xf32>
    %cst_55 = arith.constant 9.99999974E-6 : f32
    %204 = vector.broadcast %cst_55 : f32 to vector<16x1xf32>
    %205 = arith.addf %201, %204 : vector<16x1xf32>
    %206 = math.rsqrt %205 : vector<16x1xf32>
    %207 = vector.broadcast %206 : vector<16x1xf32> to vector<16x32xf32>
    %208 = arith.mulf %203, %207 : vector<16x32xf32>
    %209 = vector.broadcast %189 : vector<1x32xf32> to vector<16x32xf32>
    %210 = arith.mulf %208, %209 : vector<16x32xf32>
    %211 = vector.broadcast %190 : vector<1x32xf32> to vector<16x32xf32>
    %212 = arith.addf %210, %211 : vector<16x32xf32>
    %213 = arith.truncf %212 : vector<16x32xf32> to vector<16x32xbf16>
    %cst_56 = arith.constant dense<0.000000e+00> : vector<16x64xf32>
    %214 = tpu.matmul %213, %8, %cst_56 {dimension_numbers = #tpu.dot_dimension_numbers<[1], [0], [0], [1], [0, 0, 1, 1], [], []>} : vector<16x32xbf16>, vector<32x64xbf16>, vector<16x64xf32> -> vector<16x64xf32>
    %215 = vector.extract_strided_slice %12 {offsets = [2, 0], sizes = [1, 64], strides = [1, 1]} : vector<8x96xf32> to vector<1x64xf32>
    %216 = vector.broadcast %215 : vector<1x64xf32> to vector<16x64xf32>
    %217 = arith.addf %214, %216 : vector<16x64xf32>
    %cst_57 = arith.constant 0.000000e+00 : f32
    %218 = vector.broadcast %cst_57 : f32 to vector<16x64xf32>
    %219 = arith.maximumf %217, %218 : vector<16x64xf32>
    %220 = arith.truncf %219 : vector<16x64xf32> to vector<16x64xbf16>
    %cst_58 = arith.constant dense<0.000000e+00> : vector<16x32xf32>
    %221 = tpu.matmul %220, %10, %cst_58 {dimension_numbers = #tpu.dot_dimension_numbers<[1], [0], [0], [1], [0, 0, 1, 1], [], []>} : vector<16x64xbf16>, vector<64x32xbf16>, vector<16x32xf32> -> vector<16x32xf32>
    %222 = vector.extract_strided_slice %12 {offsets = [3, 0], sizes = [1, 32], strides = [1, 1]} : vector<8x96xf32> to vector<1x32xf32>
    %223 = vector.broadcast %222 : vector<1x32xf32> to vector<16x32xf32>
    %224 = arith.addf %221, %223 : vector<16x32xf32>
    %225 = arith.addf %212, %224 : vector<16x32xf32>
    %226 = vector.extract_strided_slice %12 {offsets = [6, 0], sizes = [1, 32], strides = [1, 1]} : vector<8x96xf32> to vector<1x32xf32>
    %227 = vector.extract_strided_slice %12 {offsets = [7, 0], sizes = [1, 32], strides = [1, 1]} : vector<8x96xf32> to vector<1x32xf32>
    %cst_59 = arith.constant dense<0.000000e+00> : vector<16xf32>
    %228 = vector.multi_reduction <add>, %225, %cst_59 [1] : vector<16x32xf32> to vector<16xf32>
    %229 = vector.shape_cast %228 : vector<16xf32> to vector<16x1xf32>
    %cst_60 = arith.constant 3.200000e+01 : f32
    %230 = vector.broadcast %cst_60 : f32 to vector<16x1xf32>
    %231 = arith.divf %229, %230 : vector<16x1xf32>
    %232 = vector.broadcast %231 : vector<16x1xf32> to vector<16x32xf32>
    %233 = arith.subf %225, %232 : vector<16x32xf32>
    %234 = arith.mulf %233, %233 : vector<16x32xf32>
    %cst_61 = arith.constant dense<0.000000e+00> : vector<16xf32>
    %235 = vector.multi_reduction <add>, %234, %cst_61 [1] : vector<16x32xf32> to vector<16xf32>
    %236 = vector.shape_cast %235 : vector<16xf32> to vector<16x1xf32>
    %cst_62 = arith.constant 3.200000e+01 : f32
    %237 = vector.broadcast %cst_62 : f32 to vector<16x1xf32>
    %238 = arith.divf %236, %237 : vector<16x1xf32>
    %239 = vector.broadcast %231 : vector<16x1xf32> to vector<16x32xf32>
    %240 = arith.subf %225, %239 : vector<16x32xf32>
    %cst_63 = arith.constant 9.99999974E-6 : f32
    %241 = vector.broadcast %cst_63 : f32 to vector<16x1xf32>
    %242 = arith.addf %238, %241 : vector<16x1xf32>
    %243 = math.rsqrt %242 : vector<16x1xf32>
    %244 = vector.broadcast %243 : vector<16x1xf32> to vector<16x32xf32>
    %245 = arith.mulf %240, %244 : vector<16x32xf32>
    %246 = vector.broadcast %226 : vector<1x32xf32> to vector<16x32xf32>
    %247 = arith.mulf %245, %246 : vector<16x32xf32>
    %248 = vector.broadcast %227 : vector<1x32xf32> to vector<16x32xf32>
    %249 = arith.addf %247, %248 : vector<16x32xf32>
    %c1 = arith.constant 1 : index
    %c0_64 = arith.constant 0 : index
    %c0_65 = arith.constant 0 : index
    %250 = vector.load %arg2[%c1, %c0_64, %c0_65] : memref<2x32x96xbf16, #tpu.memory_space<vmem>>, vector<1x32x96xbf16>
    %251 = vector.shape_cast %250 : vector<1x32x96xbf16> to vector<32x96xbf16>
    %c1_66 = arith.constant 1 : index
    %c0_67 = arith.constant 0 : index
    %c0_68 = arith.constant 0 : index
    %252 = vector.load %arg3[%c1_66, %c0_67, %c0_68] : memref<2x32x32xbf16, #tpu.memory_space<vmem>>, vector<1x32x32xbf16>
    %253 = vector.shape_cast %252 : vector<1x32x32xbf16> to vector<32x32xbf16>
    %c1_69 = arith.constant 1 : index
    %c0_70 = arith.constant 0 : index
    %c0_71 = arith.constant 0 : index
    %254 = vector.load %arg4[%c1_69, %c0_70, %c0_71] : memref<2x32x64xbf16, #tpu.memory_space<vmem>>, vector<1x32x64xbf16>
    %255 = vector.shape_cast %254 : vector<1x32x64xbf16> to vector<32x64xbf16>
    %c1_72 = arith.constant 1 : index
    %c0_73 = arith.constant 0 : index
    %c0_74 = arith.constant 0 : index
    %256 = vector.load %arg5[%c1_72, %c0_73, %c0_74] : memref<2x64x32xbf16, #tpu.memory_space<vmem>>, vector<1x64x32xbf16>
    %257 = vector.shape_cast %256 : vector<1x64x32xbf16> to vector<64x32xbf16>
    %c1_75 = arith.constant 1 : index
    %c0_76 = arith.constant 0 : index
    %c0_77 = arith.constant 0 : index
    %258 = vector.load %arg6[%c1_75, %c0_76, %c0_77] : memref<2x8x96xf32, #tpu.memory_space<vmem>>, vector<1x8x96xf32>
    %259 = vector.shape_cast %258 : vector<1x8x96xf32> to vector<8x96xf32>
    %260 = arith.truncf %249 : vector<16x32xf32> to vector<16x32xbf16>
    %cst_78 = arith.constant dense<0.000000e+00> : vector<16x96xf32>
    %261 = tpu.matmul %260, %251, %cst_78 {dimension_numbers = #tpu.dot_dimension_numbers<[1], [0], [0], [1], [0, 0, 1, 1], [], []>} : vector<16x32xbf16>, vector<32x96xbf16>, vector<16x96xf32> -> vector<16x96xf32>
    %262 = vector.extract_strided_slice %259 {offsets = [0, 0], sizes = [1, 96], strides = [1, 1]} : vector<8x96xf32> to vector<1x96xf32>
    %263 = vector.broadcast %262 : vector<1x96xf32> to vector<16x96xf32>
    %264 = arith.addf %261, %263 : vector<16x96xf32>
    %265 = vector.extract_strided_slice %264 {offsets = [0, 0], sizes = [8, 96], strides = [1, 1]} : vector<16x96xf32> to vector<8x96xf32>
    %266 = vector.extract_strided_slice %265 {offsets = [0, 0], sizes = [8, 8], strides = [1, 1]} : vector<8x96xf32> to vector<8x8xf32>
    %267 = vector.broadcast %1 : f32 to vector<8x8xf32>
    %268 = arith.mulf %266, %267 : vector<8x8xf32>
    %269 = arith.truncf %268 : vector<8x8xf32> to vector<8x8xbf16>
    %270 = vector.extract_strided_slice %265 {offsets = [0, 32], sizes = [8, 8], strides = [1, 1]} : vector<8x96xf32> to vector<8x8xf32>
    %271 = arith.truncf %270 : vector<8x8xf32> to vector<8x8xbf16>
    %272 = vector.extract_strided_slice %265 {offsets = [0, 64], sizes = [8, 8], strides = [1, 1]} : vector<8x96xf32> to vector<8x8xf32>
    %273 = arith.truncf %272 : vector<8x8xf32> to vector<8x8xbf16>
    %cst_79 = arith.constant dense<0.000000e+00> : vector<8x8xf32>
    %274 = tpu.matmul %269, %271, %cst_79 {dimension_numbers = #tpu.dot_dimension_numbers<[1], [1], [0], [0], [0, 0, 1, 0], [], []>} : vector<8x8xbf16>, vector<8x8xbf16>, vector<8x8xf32> -> vector<8x8xf32>
    %cst_80 = arith.constant dense<0xFF800000> : vector<8xf32>
    %275 = vector.multi_reduction <maximumf>, %274, %cst_80 [1] : vector<8x8xf32> to vector<8xf32>
    %276 = vector.shape_cast %275 : vector<8xf32> to vector<8x1xf32>
    %277 = vector.broadcast %276 : vector<8x1xf32> to vector<8x8xf32>
    %278 = arith.subf %274, %277 : vector<8x8xf32>
    %279 = math.exp %278 : vector<8x8xf32>
    %cst_81 = arith.constant dense<0.000000e+00> : vector<8xf32>
    %280 = vector.multi_reduction <add>, %279, %cst_81 [1] : vector<8x8xf32> to vector<8xf32>
    %281 = vector.shape_cast %280 : vector<8xf32> to vector<8x1xf32>
    %282 = vector.broadcast %281 : vector<8x1xf32> to vector<8x8xf32>
    %283 = arith.divf %279, %282 : vector<8x8xf32>
    %284 = arith.truncf %283 : vector<8x8xf32> to vector<8x8xbf16>
    %cst_82 = arith.constant dense<0.000000e+00> : vector<8x8xf32>
    %285 = tpu.matmul %284, %273, %cst_82 {dimension_numbers = #tpu.dot_dimension_numbers<[1], [0], [0], [1], [0, 0, 1, 1], [], []>} : vector<8x8xbf16>, vector<8x8xbf16>, vector<8x8xf32> -> vector<8x8xf32>
    %286 = vector.extract_strided_slice %265 {offsets = [0, 8], sizes = [8, 8], strides = [1, 1]} : vector<8x96xf32> to vector<8x8xf32>
    %287 = vector.broadcast %1 : f32 to vector<8x8xf32>
    %288 = arith.mulf %286, %287 : vector<8x8xf32>
    %289 = arith.truncf %288 : vector<8x8xf32> to vector<8x8xbf16>
    %290 = vector.extract_strided_slice %265 {offsets = [0, 40], sizes = [8, 8], strides = [1, 1]} : vector<8x96xf32> to vector<8x8xf32>
    %291 = arith.truncf %290 : vector<8x8xf32> to vector<8x8xbf16>
    %292 = vector.extract_strided_slice %265 {offsets = [0, 72], sizes = [8, 8], strides = [1, 1]} : vector<8x96xf32> to vector<8x8xf32>
    %293 = arith.truncf %292 : vector<8x8xf32> to vector<8x8xbf16>
    %cst_83 = arith.constant dense<0.000000e+00> : vector<8x8xf32>
    %294 = tpu.matmul %289, %291, %cst_83 {dimension_numbers = #tpu.dot_dimension_numbers<[1], [1], [0], [0], [0, 0, 1, 0], [], []>} : vector<8x8xbf16>, vector<8x8xbf16>, vector<8x8xf32> -> vector<8x8xf32>
    %cst_84 = arith.constant dense<0xFF800000> : vector<8xf32>
    %295 = vector.multi_reduction <maximumf>, %294, %cst_84 [1] : vector<8x8xf32> to vector<8xf32>
    %296 = vector.shape_cast %295 : vector<8xf32> to vector<8x1xf32>
    %297 = vector.broadcast %296 : vector<8x1xf32> to vector<8x8xf32>
    %298 = arith.subf %294, %297 : vector<8x8xf32>
    %299 = math.exp %298 : vector<8x8xf32>
    %cst_85 = arith.constant dense<0.000000e+00> : vector<8xf32>
    %300 = vector.multi_reduction <add>, %299, %cst_85 [1] : vector<8x8xf32> to vector<8xf32>
    %301 = vector.shape_cast %300 : vector<8xf32> to vector<8x1xf32>
    %302 = vector.broadcast %301 : vector<8x1xf32> to vector<8x8xf32>
    %303 = arith.divf %299, %302 : vector<8x8xf32>
    %304 = arith.truncf %303 : vector<8x8xf32> to vector<8x8xbf16>
    %cst_86 = arith.constant dense<0.000000e+00> : vector<8x8xf32>
    %305 = tpu.matmul %304, %293, %cst_86 {dimension_numbers = #tpu.dot_dimension_numbers<[1], [0], [0], [1], [0, 0, 1, 1], [], []>} : vector<8x8xbf16>, vector<8x8xbf16>, vector<8x8xf32> -> vector<8x8xf32>
    %306 = vector.extract_strided_slice %265 {offsets = [0, 16], sizes = [8, 8], strides = [1, 1]} : vector<8x96xf32> to vector<8x8xf32>
    %307 = vector.broadcast %1 : f32 to vector<8x8xf32>
    %308 = arith.mulf %306, %307 : vector<8x8xf32>
    %309 = arith.truncf %308 : vector<8x8xf32> to vector<8x8xbf16>
    %310 = vector.extract_strided_slice %265 {offsets = [0, 48], sizes = [8, 8], strides = [1, 1]} : vector<8x96xf32> to vector<8x8xf32>
    %311 = arith.truncf %310 : vector<8x8xf32> to vector<8x8xbf16>
    %312 = vector.extract_strided_slice %265 {offsets = [0, 80], sizes = [8, 8], strides = [1, 1]} : vector<8x96xf32> to vector<8x8xf32>
    %313 = arith.truncf %312 : vector<8x8xf32> to vector<8x8xbf16>
    %cst_87 = arith.constant dense<0.000000e+00> : vector<8x8xf32>
    %314 = tpu.matmul %309, %311, %cst_87 {dimension_numbers = #tpu.dot_dimension_numbers<[1], [1], [0], [0], [0, 0, 1, 0], [], []>} : vector<8x8xbf16>, vector<8x8xbf16>, vector<8x8xf32> -> vector<8x8xf32>
    %cst_88 = arith.constant dense<0xFF800000> : vector<8xf32>
    %315 = vector.multi_reduction <maximumf>, %314, %cst_88 [1] : vector<8x8xf32> to vector<8xf32>
    %316 = vector.shape_cast %315 : vector<8xf32> to vector<8x1xf32>
    %317 = vector.broadcast %316 : vector<8x1xf32> to vector<8x8xf32>
    %318 = arith.subf %314, %317 : vector<8x8xf32>
    %319 = math.exp %318 : vector<8x8xf32>
    %cst_89 = arith.constant dense<0.000000e+00> : vector<8xf32>
    %320 = vector.multi_reduction <add>, %319, %cst_89 [1] : vector<8x8xf32> to vector<8xf32>
    %321 = vector.shape_cast %320 : vector<8xf32> to vector<8x1xf32>
    %322 = vector.broadcast %321 : vector<8x1xf32> to vector<8x8xf32>
    %323 = arith.divf %319, %322 : vector<8x8xf32>
    %324 = arith.truncf %323 : vector<8x8xf32> to vector<8x8xbf16>
    %cst_90 = arith.constant dense<0.000000e+00> : vector<8x8xf32>
    %325 = tpu.matmul %324, %313, %cst_90 {dimension_numbers = #tpu.dot_dimension_numbers<[1], [0], [0], [1], [0, 0, 1, 1], [], []>} : vector<8x8xbf16>, vector<8x8xbf16>, vector<8x8xf32> -> vector<8x8xf32>
    %326 = vector.extract_strided_slice %265 {offsets = [0, 24], sizes = [8, 8], strides = [1, 1]} : vector<8x96xf32> to vector<8x8xf32>
    %327 = vector.broadcast %1 : f32 to vector<8x8xf32>
    %328 = arith.mulf %326, %327 : vector<8x8xf32>
    %329 = arith.truncf %328 : vector<8x8xf32> to vector<8x8xbf16>
    %330 = vector.extract_strided_slice %265 {offsets = [0, 56], sizes = [8, 8], strides = [1, 1]} : vector<8x96xf32> to vector<8x8xf32>
    %331 = arith.truncf %330 : vector<8x8xf32> to vector<8x8xbf16>
    %332 = vector.extract_strided_slice %265 {offsets = [0, 88], sizes = [8, 8], strides = [1, 1]} : vector<8x96xf32> to vector<8x8xf32>
    %333 = arith.truncf %332 : vector<8x8xf32> to vector<8x8xbf16>
    %cst_91 = arith.constant dense<0.000000e+00> : vector<8x8xf32>
    %334 = tpu.matmul %329, %331, %cst_91 {dimension_numbers = #tpu.dot_dimension_numbers<[1], [1], [0], [0], [0, 0, 1, 0], [], []>} : vector<8x8xbf16>, vector<8x8xbf16>, vector<8x8xf32> -> vector<8x8xf32>
    %cst_92 = arith.constant dense<0xFF800000> : vector<8xf32>
    %335 = vector.multi_reduction <maximumf>, %334, %cst_92 [1] : vector<8x8xf32> to vector<8xf32>
    %336 = vector.shape_cast %335 : vector<8xf32> to vector<8x1xf32>
    %337 = vector.broadcast %336 : vector<8x1xf32> to vector<8x8xf32>
    %338 = arith.subf %334, %337 : vector<8x8xf32>
    %339 = math.exp %338 : vector<8x8xf32>
    %cst_93 = arith.constant dense<0.000000e+00> : vector<8xf32>
    %340 = vector.multi_reduction <add>, %339, %cst_93 [1] : vector<8x8xf32> to vector<8xf32>
    %341 = vector.shape_cast %340 : vector<8xf32> to vector<8x1xf32>
    %342 = vector.broadcast %341 : vector<8x1xf32> to vector<8x8xf32>
    %343 = arith.divf %339, %342 : vector<8x8xf32>
    %344 = arith.truncf %343 : vector<8x8xf32> to vector<8x8xbf16>
    %cst_94 = arith.constant dense<0.000000e+00> : vector<8x8xf32>
    %345 = tpu.matmul %344, %333, %cst_94 {dimension_numbers = #tpu.dot_dimension_numbers<[1], [0], [0], [1], [0, 0, 1, 1], [], []>} : vector<8x8xbf16>, vector<8x8xbf16>, vector<8x8xf32> -> vector<8x8xf32>
    %346 = tpu.concatenate %285, %305, %325, %345 in 1 : vector<8x8xf32>, vector<8x8xf32>, vector<8x8xf32>, vector<8x8xf32> -> vector<8x32xf32>
    %347 = vector.extract_strided_slice %264 {offsets = [8, 0], sizes = [8, 96], strides = [1, 1]} : vector<16x96xf32> to vector<8x96xf32>
    %348 = vector.extract_strided_slice %347 {offsets = [0, 0], sizes = [8, 8], strides = [1, 1]} : vector<8x96xf32> to vector<8x8xf32>
    %349 = vector.broadcast %1 : f32 to vector<8x8xf32>
    %350 = arith.mulf %348, %349 : vector<8x8xf32>
    %351 = arith.truncf %350 : vector<8x8xf32> to vector<8x8xbf16>
    %352 = vector.extract_strided_slice %347 {offsets = [0, 32], sizes = [8, 8], strides = [1, 1]} : vector<8x96xf32> to vector<8x8xf32>
    %353 = arith.truncf %352 : vector<8x8xf32> to vector<8x8xbf16>
    %354 = vector.extract_strided_slice %347 {offsets = [0, 64], sizes = [8, 8], strides = [1, 1]} : vector<8x96xf32> to vector<8x8xf32>
    %355 = arith.truncf %354 : vector<8x8xf32> to vector<8x8xbf16>
    %cst_95 = arith.constant dense<0.000000e+00> : vector<8x8xf32>
    %356 = tpu.matmul %351, %353, %cst_95 {dimension_numbers = #tpu.dot_dimension_numbers<[1], [1], [0], [0], [0, 0, 1, 0], [], []>} : vector<8x8xbf16>, vector<8x8xbf16>, vector<8x8xf32> -> vector<8x8xf32>
    %cst_96 = arith.constant dense<0xFF800000> : vector<8xf32>
    %357 = vector.multi_reduction <maximumf>, %356, %cst_96 [1] : vector<8x8xf32> to vector<8xf32>
    %358 = vector.shape_cast %357 : vector<8xf32> to vector<8x1xf32>
    %359 = vector.broadcast %358 : vector<8x1xf32> to vector<8x8xf32>
    %360 = arith.subf %356, %359 : vector<8x8xf32>
    %361 = math.exp %360 : vector<8x8xf32>
    %cst_97 = arith.constant dense<0.000000e+00> : vector<8xf32>
    %362 = vector.multi_reduction <add>, %361, %cst_97 [1] : vector<8x8xf32> to vector<8xf32>
    %363 = vector.shape_cast %362 : vector<8xf32> to vector<8x1xf32>
    %364 = vector.broadcast %363 : vector<8x1xf32> to vector<8x8xf32>
    %365 = arith.divf %361, %364 : vector<8x8xf32>
    %366 = arith.truncf %365 : vector<8x8xf32> to vector<8x8xbf16>
    %cst_98 = arith.constant dense<0.000000e+00> : vector<8x8xf32>
    %367 = tpu.matmul %366, %355, %cst_98 {dimension_numbers = #tpu.dot_dimension_numbers<[1], [0], [0], [1], [0, 0, 1, 1], [], []>} : vector<8x8xbf16>, vector<8x8xbf16>, vector<8x8xf32> -> vector<8x8xf32>
    %368 = vector.extract_strided_slice %347 {offsets = [0, 8], sizes = [8, 8], strides = [1, 1]} : vector<8x96xf32> to vector<8x8xf32>
    %369 = vector.broadcast %1 : f32 to vector<8x8xf32>
    %370 = arith.mulf %368, %369 : vector<8x8xf32>
    %371 = arith.truncf %370 : vector<8x8xf32> to vector<8x8xbf16>
    %372 = vector.extract_strided_slice %347 {offsets = [0, 40], sizes = [8, 8], strides = [1, 1]} : vector<8x96xf32> to vector<8x8xf32>
    %373 = arith.truncf %372 : vector<8x8xf32> to vector<8x8xbf16>
    %374 = vector.extract_strided_slice %347 {offsets = [0, 72], sizes = [8, 8], strides = [1, 1]} : vector<8x96xf32> to vector<8x8xf32>
    %375 = arith.truncf %374 : vector<8x8xf32> to vector<8x8xbf16>
    %cst_99 = arith.constant dense<0.000000e+00> : vector<8x8xf32>
    %376 = tpu.matmul %371, %373, %cst_99 {dimension_numbers = #tpu.dot_dimension_numbers<[1], [1], [0], [0], [0, 0, 1, 0], [], []>} : vector<8x8xbf16>, vector<8x8xbf16>, vector<8x8xf32> -> vector<8x8xf32>
    %cst_100 = arith.constant dense<0xFF800000> : vector<8xf32>
    %377 = vector.multi_reduction <maximumf>, %376, %cst_100 [1] : vector<8x8xf32> to vector<8xf32>
    %378 = vector.shape_cast %377 : vector<8xf32> to vector<8x1xf32>
    %379 = vector.broadcast %378 : vector<8x1xf32> to vector<8x8xf32>
    %380 = arith.subf %376, %379 : vector<8x8xf32>
    %381 = math.exp %380 : vector<8x8xf32>
    %cst_101 = arith.constant dense<0.000000e+00> : vector<8xf32>
    %382 = vector.multi_reduction <add>, %381, %cst_101 [1] : vector<8x8xf32> to vector<8xf32>
    %383 = vector.shape_cast %382 : vector<8xf32> to vector<8x1xf32>
    %384 = vector.broadcast %383 : vector<8x1xf32> to vector<8x8xf32>
    %385 = arith.divf %381, %384 : vector<8x8xf32>
    %386 = arith.truncf %385 : vector<8x8xf32> to vector<8x8xbf16>
    %cst_102 = arith.constant dense<0.000000e+00> : vector<8x8xf32>
    %387 = tpu.matmul %386, %375, %cst_102 {dimension_numbers = #tpu.dot_dimension_numbers<[1], [0], [0], [1], [0, 0, 1, 1], [], []>} : vector<8x8xbf16>, vector<8x8xbf16>, vector<8x8xf32> -> vector<8x8xf32>
    %388 = vector.extract_strided_slice %347 {offsets = [0, 16], sizes = [8, 8], strides = [1, 1]} : vector<8x96xf32> to vector<8x8xf32>
    %389 = vector.broadcast %1 : f32 to vector<8x8xf32>
    %390 = arith.mulf %388, %389 : vector<8x8xf32>
    %391 = arith.truncf %390 : vector<8x8xf32> to vector<8x8xbf16>
    %392 = vector.extract_strided_slice %347 {offsets = [0, 48], sizes = [8, 8], strides = [1, 1]} : vector<8x96xf32> to vector<8x8xf32>
    %393 = arith.truncf %392 : vector<8x8xf32> to vector<8x8xbf16>
    %394 = vector.extract_strided_slice %347 {offsets = [0, 80], sizes = [8, 8], strides = [1, 1]} : vector<8x96xf32> to vector<8x8xf32>
    %395 = arith.truncf %394 : vector<8x8xf32> to vector<8x8xbf16>
    %cst_103 = arith.constant dense<0.000000e+00> : vector<8x8xf32>
    %396 = tpu.matmul %391, %393, %cst_103 {dimension_numbers = #tpu.dot_dimension_numbers<[1], [1], [0], [0], [0, 0, 1, 0], [], []>} : vector<8x8xbf16>, vector<8x8xbf16>, vector<8x8xf32> -> vector<8x8xf32>
    %cst_104 = arith.constant dense<0xFF800000> : vector<8xf32>
    %397 = vector.multi_reduction <maximumf>, %396, %cst_104 [1] : vector<8x8xf32> to vector<8xf32>
    %398 = vector.shape_cast %397 : vector<8xf32> to vector<8x1xf32>
    %399 = vector.broadcast %398 : vector<8x1xf32> to vector<8x8xf32>
    %400 = arith.subf %396, %399 : vector<8x8xf32>
    %401 = math.exp %400 : vector<8x8xf32>
    %cst_105 = arith.constant dense<0.000000e+00> : vector<8xf32>
    %402 = vector.multi_reduction <add>, %401, %cst_105 [1] : vector<8x8xf32> to vector<8xf32>
    %403 = vector.shape_cast %402 : vector<8xf32> to vector<8x1xf32>
    %404 = vector.broadcast %403 : vector<8x1xf32> to vector<8x8xf32>
    %405 = arith.divf %401, %404 : vector<8x8xf32>
    %406 = arith.truncf %405 : vector<8x8xf32> to vector<8x8xbf16>
    %cst_106 = arith.constant dense<0.000000e+00> : vector<8x8xf32>
    %407 = tpu.matmul %406, %395, %cst_106 {dimension_numbers = #tpu.dot_dimension_numbers<[1], [0], [0], [1], [0, 0, 1, 1], [], []>} : vector<8x8xbf16>, vector<8x8xbf16>, vector<8x8xf32> -> vector<8x8xf32>
    %408 = vector.extract_strided_slice %347 {offsets = [0, 24], sizes = [8, 8], strides = [1, 1]} : vector<8x96xf32> to vector<8x8xf32>
    %409 = vector.broadcast %1 : f32 to vector<8x8xf32>
    %410 = arith.mulf %408, %409 : vector<8x8xf32>
    %411 = arith.truncf %410 : vector<8x8xf32> to vector<8x8xbf16>
    %412 = vector.extract_strided_slice %347 {offsets = [0, 56], sizes = [8, 8], strides = [1, 1]} : vector<8x96xf32> to vector<8x8xf32>
    %413 = arith.truncf %412 : vector<8x8xf32> to vector<8x8xbf16>
    %414 = vector.extract_strided_slice %347 {offsets = [0, 88], sizes = [8, 8], strides = [1, 1]} : vector<8x96xf32> to vector<8x8xf32>
    %415 = arith.truncf %414 : vector<8x8xf32> to vector<8x8xbf16>
    %cst_107 = arith.constant dense<0.000000e+00> : vector<8x8xf32>
    %416 = tpu.matmul %411, %413, %cst_107 {dimension_numbers = #tpu.dot_dimension_numbers<[1], [1], [0], [0], [0, 0, 1, 0], [], []>} : vector<8x8xbf16>, vector<8x8xbf16>, vector<8x8xf32> -> vector<8x8xf32>
    %cst_108 = arith.constant dense<0xFF800000> : vector<8xf32>
    %417 = vector.multi_reduction <maximumf>, %416, %cst_108 [1] : vector<8x8xf32> to vector<8xf32>
    %418 = vector.shape_cast %417 : vector<8xf32> to vector<8x1xf32>
    %419 = vector.broadcast %418 : vector<8x1xf32> to vector<8x8xf32>
    %420 = arith.subf %416, %419 : vector<8x8xf32>
    %421 = math.exp %420 : vector<8x8xf32>
    %cst_109 = arith.constant dense<0.000000e+00> : vector<8xf32>
    %422 = vector.multi_reduction <add>, %421, %cst_109 [1] : vector<8x8xf32> to vector<8xf32>
    %423 = vector.shape_cast %422 : vector<8xf32> to vector<8x1xf32>
    %424 = vector.broadcast %423 : vector<8x1xf32> to vector<8x8xf32>
    %425 = arith.divf %421, %424 : vector<8x8xf32>
    %426 = arith.truncf %425 : vector<8x8xf32> to vector<8x8xbf16>
    %cst_110 = arith.constant dense<0.000000e+00> : vector<8x8xf32>
    %427 = tpu.matmul %426, %415, %cst_110 {dimension_numbers = #tpu.dot_dimension_numbers<[1], [0], [0], [1], [0, 0, 1, 1], [], []>} : vector<8x8xbf16>, vector<8x8xbf16>, vector<8x8xf32> -> vector<8x8xf32>
    %428 = tpu.concatenate %367, %387, %407, %427 in 1 : vector<8x8xf32>, vector<8x8xf32>, vector<8x8xf32>, vector<8x8xf32> -> vector<8x32xf32>
    %429 = tpu.concatenate %346, %428 in 0 : vector<8x32xf32>, vector<8x32xf32> -> vector<16x32xf32>
    %430 = arith.truncf %429 : vector<16x32xf32> to vector<16x32xbf16>
    %cst_111 = arith.constant dense<0.000000e+00> : vector<16x32xf32>
    %431 = tpu.matmul %430, %253, %cst_111 {dimension_numbers = #tpu.dot_dimension_numbers<[1], [0], [0], [1], [0, 0, 1, 1], [], []>} : vector<16x32xbf16>, vector<32x32xbf16>, vector<16x32xf32> -> vector<16x32xf32>
    %432 = vector.extract_strided_slice %259 {offsets = [1, 0], sizes = [1, 32], strides = [1, 1]} : vector<8x96xf32> to vector<1x32xf32>
    %433 = vector.broadcast %432 : vector<1x32xf32> to vector<16x32xf32>
    %434 = arith.addf %431, %433 : vector<16x32xf32>
    %435 = arith.addf %249, %434 : vector<16x32xf32>
    %436 = vector.extract_strided_slice %259 {offsets = [4, 0], sizes = [1, 32], strides = [1, 1]} : vector<8x96xf32> to vector<1x32xf32>
    %437 = vector.extract_strided_slice %259 {offsets = [5, 0], sizes = [1, 32], strides = [1, 1]} : vector<8x96xf32> to vector<1x32xf32>
    %cst_112 = arith.constant dense<0.000000e+00> : vector<16xf32>
    %438 = vector.multi_reduction <add>, %435, %cst_112 [1] : vector<16x32xf32> to vector<16xf32>
    %439 = vector.shape_cast %438 : vector<16xf32> to vector<16x1xf32>
    %cst_113 = arith.constant 3.200000e+01 : f32
    %440 = vector.broadcast %cst_113 : f32 to vector<16x1xf32>
    %441 = arith.divf %439, %440 : vector<16x1xf32>
    %442 = vector.broadcast %441 : vector<16x1xf32> to vector<16x32xf32>
    %443 = arith.subf %435, %442 : vector<16x32xf32>
    %444 = arith.mulf %443, %443 : vector<16x32xf32>
    %cst_114 = arith.constant dense<0.000000e+00> : vector<16xf32>
    %445 = vector.multi_reduction <add>, %444, %cst_114 [1] : vector<16x32xf32> to vector<16xf32>
    %446 = vector.shape_cast %445 : vector<16xf32> to vector<16x1xf32>
    %cst_115 = arith.constant 3.200000e+01 : f32
    %447 = vector.broadcast %cst_115 : f32 to vector<16x1xf32>
    %448 = arith.divf %446, %447 : vector<16x1xf32>
    %449 = vector.broadcast %441 : vector<16x1xf32> to vector<16x32xf32>
    %450 = arith.subf %435, %449 : vector<16x32xf32>
    %cst_116 = arith.constant 9.99999974E-6 : f32
    %451 = vector.broadcast %cst_116 : f32 to vector<16x1xf32>
    %452 = arith.addf %448, %451 : vector<16x1xf32>
    %453 = math.rsqrt %452 : vector<16x1xf32>
    %454 = vector.broadcast %453 : vector<16x1xf32> to vector<16x32xf32>
    %455 = arith.mulf %450, %454 : vector<16x32xf32>
    %456 = vector.broadcast %436 : vector<1x32xf32> to vector<16x32xf32>
    %457 = arith.mulf %455, %456 : vector<16x32xf32>
    %458 = vector.broadcast %437 : vector<1x32xf32> to vector<16x32xf32>
    %459 = arith.addf %457, %458 : vector<16x32xf32>
    %460 = arith.truncf %459 : vector<16x32xf32> to vector<16x32xbf16>
    %cst_117 = arith.constant dense<0.000000e+00> : vector<16x64xf32>
    %461 = tpu.matmul %460, %255, %cst_117 {dimension_numbers = #tpu.dot_dimension_numbers<[1], [0], [0], [1], [0, 0, 1, 1], [], []>} : vector<16x32xbf16>, vector<32x64xbf16>, vector<16x64xf32> -> vector<16x64xf32>
    %462 = vector.extract_strided_slice %259 {offsets = [2, 0], sizes = [1, 64], strides = [1, 1]} : vector<8x96xf32> to vector<1x64xf32>
    %463 = vector.broadcast %462 : vector<1x64xf32> to vector<16x64xf32>
    %464 = arith.addf %461, %463 : vector<16x64xf32>
    %cst_118 = arith.constant 0.000000e+00 : f32
    %465 = vector.broadcast %cst_118 : f32 to vector<16x64xf32>
    %466 = arith.maximumf %464, %465 : vector<16x64xf32>
    %467 = arith.truncf %466 : vector<16x64xf32> to vector<16x64xbf16>
    %cst_119 = arith.constant dense<0.000000e+00> : vector<16x32xf32>
    %468 = tpu.matmul %467, %257, %cst_119 {dimension_numbers = #tpu.dot_dimension_numbers<[1], [0], [0], [1], [0, 0, 1, 1], [], []>} : vector<16x64xbf16>, vector<64x32xbf16>, vector<16x32xf32> -> vector<16x32xf32>
    %469 = vector.extract_strided_slice %259 {offsets = [3, 0], sizes = [1, 32], strides = [1, 1]} : vector<8x96xf32> to vector<1x32xf32>
    %470 = vector.broadcast %469 : vector<1x32xf32> to vector<16x32xf32>
    %471 = arith.addf %468, %470 : vector<16x32xf32>
    %472 = arith.addf %459, %471 : vector<16x32xf32>
    %473 = vector.extract_strided_slice %259 {offsets = [6, 0], sizes = [1, 32], strides = [1, 1]} : vector<8x96xf32> to vector<1x32xf32>
    %474 = vector.extract_strided_slice %259 {offsets = [7, 0], sizes = [1, 32], strides = [1, 1]} : vector<8x96xf32> to vector<1x32xf32>
    %cst_120 = arith.constant dense<0.000000e+00> : vector<16xf32>
    %475 = vector.multi_reduction <add>, %472, %cst_120 [1] : vector<16x32xf32> to vector<16xf32>
    %476 = vector.shape_cast %475 : vector<16xf32> to vector<16x1xf32>
    %cst_121 = arith.constant 3.200000e+01 : f32
    %477 = vector.broadcast %cst_121 : f32 to vector<16x1xf32>
    %478 = arith.divf %476, %477 : vector<16x1xf32>
    %479 = vector.broadcast %478 : vector<16x1xf32> to vector<16x32xf32>
    %480 = arith.subf %472, %479 : vector<16x32xf32>
    %481 = arith.mulf %480, %480 : vector<16x32xf32>
    %cst_122 = arith.constant dense<0.000000e+00> : vector<16xf32>
    %482 = vector.multi_reduction <add>, %481, %cst_122 [1] : vector<16x32xf32> to vector<16xf32>
    %483 = vector.shape_cast %482 : vector<16xf32> to vector<16x1xf32>
    %cst_123 = arith.constant 3.200000e+01 : f32
    %484 = vector.broadcast %cst_123 : f32 to vector<16x1xf32>
    %485 = arith.divf %483, %484 : vector<16x1xf32>
    %486 = vector.broadcast %478 : vector<16x1xf32> to vector<16x32xf32>
    %487 = arith.subf %472, %486 : vector<16x32xf32>
    %cst_124 = arith.constant 9.99999974E-6 : f32
    %488 = vector.broadcast %cst_124 : f32 to vector<16x1xf32>
    %489 = arith.addf %485, %488 : vector<16x1xf32>
    %490 = math.rsqrt %489 : vector<16x1xf32>
    %491 = vector.broadcast %490 : vector<16x1xf32> to vector<16x32xf32>
    %492 = arith.mulf %487, %491 : vector<16x32xf32>
    %493 = vector.broadcast %473 : vector<1x32xf32> to vector<16x32xf32>
    %494 = arith.mulf %492, %493 : vector<16x32xf32>
    %495 = vector.broadcast %474 : vector<1x32xf32> to vector<16x32xf32>
    %496 = arith.addf %494, %495 : vector<16x32xf32>
    %c0_125 = arith.constant 0 : index
    %c0_126 = arith.constant 0 : index
    %497 = vector.load %arg7[%c0_125, %c0_126] : memref<16x32xf32, #tpu.memory_space<vmem>>, vector<16x32xf32>
    tpu.vector_store %arg7[%c0_125, %c0_126], %496 {strides = array<i32>} : memref<16x32xf32, #tpu.memory_space<vmem>>, vector<16x32xf32>,
    return
  }
  func.func @transform_0(%arg0: i32) -> (i32, i32) {
    %c0_i32 = arith.constant 0 : i32
    %c0_i32_0 = arith.constant 0 : i32
    %c0_i32_1 = arith.constant 0 : i32
    return %c0_i32, %c0_i32_0 : i32, i32
  }
  func.func @transform_1(%arg0: i32) -> (i32, i32, i32) {
    %c0_i32 = arith.constant 0 : i32
    %c0_i32_0 = arith.constant 0 : i32
    %c0_i32_1 = arith.constant 0 : i32
    %c0_i32_2 = arith.constant 0 : i32
    return %c0_i32, %c0_i32_0, %c0_i32_1 : i32, i32, i32
  }
  func.func @transform_2(%arg0: i32) -> (i32, i32, i32) {
    %c0_i32 = arith.constant 0 : i32
    %c0_i32_0 = arith.constant 0 : i32
    %c0_i32_1 = arith.constant 0 : i32
    %c0_i32_2 = arith.constant 0 : i32
    return %c0_i32, %c0_i32_0, %c0_i32_1 : i32, i32, i32
  }
  func.func @transform_3(%arg0: i32) -> (i32, i32, i32) {
    %c0_i32 = arith.constant 0 : i32
    %c0_i32_0 = arith.constant 0 : i32
    %c0_i32_1 = arith.constant 0 : i32
    %c0_i32_2 = arith.constant 0 : i32
    return %c0_i32, %c0_i32_0, %c0_i32_1 : i32, i32, i32
  }
  func.func @transform_4(%arg0: i32) -> (i32, i32, i32) {
    %c0_i32 = arith.constant 0 : i32
    %c0_i32_0 = arith.constant 0 : i32
    %c0_i32_1 = arith.constant 0 : i32
    %c0_i32_2 = arith.constant 0 : i32
    return %c0_i32, %c0_i32_0, %c0_i32_1 : i32, i32, i32
  }
  func.func @transform_5(%arg0: i32) -> (i32, i32, i32) {
    %c0_i32 = arith.constant 0 : i32
    %c0_i32_0 = arith.constant 0 : i32
    %c0_i32_1 = arith.constant 0 : i32
    %c0_i32_2 = arith.constant 0 : i32
    return %c0_i32, %c0_i32_0, %c0_i32_1 : i32, i32, i32
  }
  func.func @transform_6(%arg0: i32) -> (i32, i32) {
    %c0_i32 = arith.constant 0 : i32
    %c0_i32_0 = arith.constant 0 : i32
    %c0_i32_1 = arith.constant 0 : i32
    return %c0_i32, %c0_i32_0 : i32, i32
  }
}

</mosaic_0001>

<bundles_post_ra>
// kernel: tpu_custom_call.1
= control target key start
LH: loop header
LB: loop body
LE: loop exit
PB: predicated region body
PF: predicated region fallthrough
CT: control target
= control target key end

     0   :  { %11 = vsyncpa [#allocation3], 0  ;;  %s3924_s0 = inlined_call_operand.hbm [shape: f32[16,32], index: 0, kind: input, shape index: {}]   ;;  %s3925_s1 = inlined_call_operand.vmem [shape: bf16[2,32,96], index: 1, kind: input, shape index: {}]   ;;  %s3926_s2 = inlined_call_operand.vmem [shape: bf16[2,32,32], index: 2, kind: input, shape index: {}]   ;;  %s3927_s3 = inlined_call_operand.vmem [shape: bf16[2,32,64], index: 3, kind: input, shape index: {}]   ;;  %s3928_s4 = inlined_call_operand.vmem [shape: bf16[2,64,32], index: 4, kind: input, shape index: {}]   ;;  %s3929_s5 = inlined_call_operand.vmem [shape: f32[2,8,96], index: 5, kind: input, shape index: {}]   ;;  %s3930_s6 = inlined_call_operand.hbm [shape: f32[16,32], index: 6, kind: output, shape index: {}]  }
   0x1   :  { %12 = vsyncpa [#allocation4], 0  ;;  %s3256_s21 = smov [#allocation2]   ;;  %s3208_s25 = scalar_lea.hbm %s3924_s0, 256 }
   0x2   :  { %s18_s22 = sshll.u32 %s3256_s21, 4  ;;  %p3209_p0 = scmp.ne.s32.totalorder %s3924_s0, %s3208_s25  ;;  %s19_s22 = int_to_ptr.vmem [resolvable:$true] %s18_s22 }
   0x3   :  { %p3212_p1 = scmp.lt.u32.totalorder %s3208_s25, %s3924_s0 }
   0x5   :  { %p3214_p2 = pnand %p3212_p1, %p3209_p0 }
   0x7   :  { %3217 = shalt.err (!%p3214_p2)
}
   0x8   :  { %s3218_s30 = scalar_lea.vmem %s19_s22, 256  ;;  %p3223_p4 = scmp.lt.s32.totalorder %s19_s22, %s19_s22 }
   0x9   :  { %p3219_p3 = scmp.ne.s32.totalorder %s19_s22, %s3218_s30  ;;  %p3224_p5 = scmp.lt.s32.totalorder %s3218_s30, %s3218_s30 }
   0xb   :  { %p3225_p6 = por %p3224_p5, %p3223_p4 }
   0xd   :  { %p3226_p7 = pnand %p3225_p6, %p3219_p3 }
   0xf   :  { %3229 = shalt.err (!%p3226_p7)
}
  0x10   :  { %s3257_s7 = smov 128   ;;  %s3258_s8 = smov 8  }
  0x11   :  { %24 = dma.hbm_to_vmem [thread:$0]  %s3924_s0, 256, %s19_s22, [#allocation3], %s3257_s7, %s3257_s7, %s3258_s8  }
  0x12   :  { %3252 = dma.done.wait [#allocation3], 256  }
  0x13   :  { %3253 = vsyncadd [#allocation3], 4294967040  ;;  %v3259_v0 = vmov 0.0   ;;  %vm3260_vm0 = vmmov 0   ;;  %v3108_v1 = vld [vmem:[%s3925_s1] sm:$0xff]   ;;  %v3109_v2 = vld [vmem:[%s3925_s1 + $0x8] sm:$0xff]   ;;  %v63_v6 = vlaneseq }
  0x14   :  { %2795 = vmatprep.subr.bf16.mxu1 %v3259_v0  ;;  %2799 = vmatprep.mubr.msk.bf16.mxu1 %vm3260_vm0, %v3259_v0  ;;  %v3337_v3 = vld [vmem:[#allocation2] sm:$0xff]  ;;  %v3339_v4 = vld [vmem:[#allocation2 + $0x8] sm:$0xff]  ;;  %vm79_vm1 = vcmask 261120   ;;  %s3261_s16 = smov 96   ;;  %s3262_s17 = smov 120   ;;  %vm130_vm2 = vcmask 64512  }
  0x15   :  { %2809 = vmatprep.subr.bf16.mxu0 %v3259_v0  ;;  %2811 = vmatprep.mubr.msk.bf16.mxu0 %vm3260_vm0, %v3259_v0  ;;  %v62_v5 = vpack.c.bf16 %v3339_v4, %v3337_v3  ;;  %v3348_v7 = vshrl.u32 %v63_v6, 7  ;;  %v3354_v9 = vld [vmem:[%s3929_s5] sm:$0xff]  ;;  %s3263_s18 = smov 88   ;;  %s3264_s19 = smov 80   ;;  %vm194_vm3 = vcmask 1043456   ;;  %vm582_vm4 = vcmask 130048  }
  0x16   :  { %2796 = vmatpush3.bf16.msra.mxu1 %v3108_v1  ;;  %s3265_s20 = smov 112   ;;  %s3266_s21 = smov 72   ;;  %vm584_vm5 = vcmask 195584   ;;  %vm1238_vm6 = vcmask 523264  }
  0x17   :  { %2797 = vmatprep.subr.bf16.mxu1 %v3259_v0  ;;  %v65_v8 = vsub.s32 0, %v3348_v7  ;;  %s3267_s22 = smov 104   ;;  %s3268_s23 = smov 56  }
  0x18   :  { %s3269_s24 = smov 64   ;;  %s3270_s25 = smov 48  }
  0x19   :  { %v66_v10 = vrot.slane %v3354_v9, %v65_v8  ;;  %s3271_s26 = smov 40   ;;  %s3272_s9 = smov 16  }
  0x1a   :  { %2798 = vmatpush3.bf16.msra.mxu1 %v3109_v2  ;;  %s3273_s10 = smov 24  }
  0x1b   :  { %2803 = vmatprep.subr.bf16.mxu1 %v3259_v0 }
  0x1d   :  { %2800 = vmatmul.mubr.msk.bf16.vlgmr.msra.gmra.mrb[0].mxu1 %vm79_vm1, %v62_v5 }
  0x1e   :  { %2805 = vmatprep.mubr.msk.bf16.mxu1 %vm3260_vm0, %v3259_v0 }
  0xf0   :  { %v117_v11 = vpop.f32.mrb[0].mxu1 }
  0xf1   :  { %v118_v12 = vadd.f32 %v117_v11, %v66_v10  ;;  %v2801_v13 = vpop.f32.mrb[1].mxu1 }
  0xf2   :  { %v120_v14 = vpop.f32.mrb[2].mxu1 }
  0xf3   :  { %v124_v15 = vmul.f32 0.35355338, %v118_v12  ;;  %v3359_v16 = vpack.c.bf16 %v118_v12, %v118_v12  ;;  %v2802_v17 = vpop.f32.mrb[3].mxu1  ;;  %v121_v19 = vadd.f32 %v120_v14, %v66_v10 }
  0xf5   :  { %v125_v18 = vpack.c.bf16 %v124_v15, %v124_v15  ;;  %128 = vrot.lane.b32.xlu0 %v3359_v16, %s3261_s16  ;;  %v586_v20 = vmul.f32 0.35355338, %v121_v19  ;;  %v3371_v21 = vpack.c.bf16 %v121_v19, %v121_v19 }
  0xf7   :  { %239 = vrot.lane.b32.xlu1 %v125_v18, %s3262_s17  ;;  %v587_v22 = vpack.c.bf16 %v586_v20, %v586_v20 }
  0xf9   :  { %241 = vrot.lane.b32.xlu0 %v3359_v16, %s3263_s18 }
  0xfb   :  { %351 = vrot.lane.b32.xlu1 %v3359_v16, %s3264_s19 }
  0xfd   :  { %349 = vrot.lane.b32.xlu0 %v125_v18, %s3265_s20 }
  0xff   :  { %461 = vrot.lane.b32.xlu1 %v3359_v16, %s3266_s21 }
 0x101   :  { %459 = vrot.lane.b32.xlu0 %v125_v18, %s3267_s22 }
 0x103   :  { %590 = vrot.lane.b32.xlu1 %v3371_v21, %s3261_s16 }
 0x105   :  { %701 = vrot.lane.b32.xlu0 %v3371_v21, %s3263_s18 }
 0x107   :  { %699 = vrot.lane.b32.xlu1 %v587_v22, %s3262_s17 }
 0x109   :  { %811 = vrot.lane.b32.xlu0 %v3371_v21, %s3264_s19 }
 0x10b   :  { %809 = vrot.lane.b32.xlu1 %v587_v22, %s3265_s20 }
 0x10d   :  { %921 = vrot.lane.b32.xlu0 %v3371_v21, %s3266_s21 }
 0x10f   :  { %919 = vrot.lane.b32.xlu1 %v587_v22, %s3267_s22 }
 0x167   :  { %v129_v23 = vpop.permute.xlu0 %128 }
 0x168   :  { %v135_v24 = vsel %vm130_vm2, %v129_v23, 0 }
 0x169   :  { %2804 = vmatpush3.bf16.xpose.msra.mxu1 %v135_v24  ;;  %v240_v26 = vpop.permute.xlu1 %239 }
 0x16a   :  { %2815 = vmatprep.subr.bf16.mxu1 %v3259_v0 }
 0x16b   :  { %v242_v25 = vpop.permute.xlu0 %241 }
 0x16c   :  { %v247_v27 = vsel %vm130_vm2, %v242_v25, 0 }
 0x16d   :  { %v352_v28 = vpop.permute.xlu1 %351 }
 0x16e   :  { %v357_v29 = vsel %vm130_vm2, %v352_v28, 0 }
 0x16f   :  { %v350_v31 = vpop.permute.xlu0 %349 }
 0x170   :  { %2806 = vmatmul.mubr.msk.bf16.vlgmr.msra.gmra.mrb[4].mxu1 %vm130_vm2, %v125_v18 }
 0x171   :  { %2816 = vmatpush3.bf16.xpose.msra.mxu1 %v247_v27  ;;  %2817 = vmatprep.mubr.msk.bf16.mxu1 %vm3260_vm0, %v3259_v0  ;;  %v462_v30 = vpop.permute.xlu1 %461 }
 0x172   :  { %2827 = vmatprep.subr.bf16.mxu1 %v3259_v0  ;;  %v467_v32 = vsel %vm130_vm2, %v462_v30, 0 }
 0x173   :  { %v460_v34 = vpop.permute.xlu0 %459 }
 0x175   :  { %v591_v33 = vpop.permute.xlu1 %590 }
 0x176   :  { %v596_v35 = vsel %vm130_vm2, %v591_v33, 0 }
 0x177   :  { %v702_v36 = vpop.permute.xlu0 %701 }
 0x178   :  { %2818 = vmatmul.mubr.msk.bf16.vlgmr.msra.gmra.mrb[8].mxu1 %vm130_vm2, %v240_v26  ;;  %v707_v37 = vsel %vm130_vm2, %v702_v36, 0 }
 0x179   :  { %2828 = vmatpush3.bf16.xpose.msra.mxu1 %v357_v29  ;;  %2829 = vmatprep.mubr.msk.bf16.mxu1 %vm3260_vm0, %v3259_v0  ;;  %v700_v39 = vpop.permute.xlu1 %699 }
 0x17a   :  { %2839 = vmatprep.subr.bf16.mxu1 %v3259_v0 }
 0x17b   :  { %v812_v38 = vpop.permute.xlu0 %811 }
 0x17c   :  { %v817_v40 = vsel %vm130_vm2, %v812_v38, 0 }
 0x17d   :  { %v810_v42 = vpop.permute.xlu1 %809 }
 0x17f   :  { %v922_v41 = vpop.permute.xlu0 %921 }
 0x180   :  { %2830 = vmatmul.mubr.msk.bf16.vlgmr.msra.gmra.mrb[12].mxu1 %vm130_vm2, %v350_v31  ;;  %v927_v43 = vsel %vm130_vm2, %v922_v41, 0 }
 0x181   :  { %2840 = vmatpush3.bf16.xpose.msra.mxu1 %v467_v32  ;;  %2841 = vmatprep.mubr.msk.bf16.mxu1 %vm3260_vm0, %v3259_v0  ;;  %v920_v44 = vpop.permute.xlu1 %919 }
 0x182   :  { %2851 = vmatprep.subr.bf16.mxu1 %v3259_v0 }
 0x188   :  { %2842 = vmatmul.mubr.msk.bf16.vlgmr.msra.gmra.mrb[16].mxu1 %vm130_vm2, %v460_v34 }
 0x189   :  { %2852 = vmatpush3.bf16.xpose.msra.mxu1 %v596_v35  ;;  %2853 = vmatprep.mubr.msk.bf16.mxu1 %vm3260_vm0, %v3259_v0 }
 0x18a   :  { %2863 = vmatprep.subr.bf16.mxu1 %v3259_v0 }
 0x190   :  { %2854 = vmatmul.mubr.msk.bf16.vlgmr.msra.gmra.mrb[20].mxu1 %vm130_vm2, %v587_v22 }
 0x191   :  { %2864 = vmatpush3.bf16.xpose.msra.mxu1 %v707_v37  ;;  %2865 = vmatprep.mubr.msk.bf16.mxu1 %vm3260_vm0, %v3259_v0 }
 0x192   :  { %2875 = vmatprep.subr.bf16.mxu1 %v3259_v0 }
 0x198   :  { %2866 = vmatmul.mubr.msk.bf16.vlgmr.msra.gmra.mrb[24].mxu1 %vm130_vm2, %v700_v39 }
 0x199   :  { %2876 = vmatpush3.bf16.xpose.msra.mxu1 %v817_v40  ;;  %2877 = vmatprep.mubr.msk.bf16.mxu1 %vm3260_vm0, %v3259_v0 }
 0x19a   :  { %2887 = vmatprep.subr.bf16.mxu1 %v3259_v0 }
 0x1a0   :  { %2878 = vmatmul.mubr.msk.bf16.vlgmr.msra.gmra.mrb[28].mxu1 %vm130_vm2, %v810_v42 }
 0x1a1   :  { %2888 = vmatpush3.bf16.xpose.msra.mxu1 %v927_v43  ;;  %2889 = vmatprep.mubr.msk.bf16.mxu1 %vm3260_vm0, %v3259_v0 }
 0x1a2   :  { %2899 = vmatprep.subr.bf16.mxu1 %v3259_v0 }
 0x1a8   :  { %2890 = vmatmul.mubr.msk.bf16.vlgmr.msra.gmra.mrb[32].mxu1 %vm130_vm2, %v920_v44 }
 0x1a9   :  { %2903 = vmatprep.mubr.msk.bf16.mxu1 %vm3260_vm0, %v3259_v0 }
 0x243   :  { %v171_v45 = vpop.f32.mrb[4].mxu1 }
 0x244   :  { %v2807_v46 = vpop.f32.mrb[5].mxu1  ;;  %v177_v47 = vsel %vm130_vm2, %v171_v45, -inf }
 0x245   :  { %178 = vmax.xlane.f32.xlu0 %v177_v47  ;;  %v174_v48 = vpop.f32.mrb[6].mxu1 }
 0x246   :  { %v2808_v49 = vpop.f32.mrb[7].mxu1 }
 0x24b   :  { %v283_v50 = vpop.f32.mrb[8].mxu1 }
 0x24c   :  { %v2819_v51 = vpop.f32.mrb[9].mxu1  ;;  %v289_v52 = vsel %vm130_vm2, %v283_v50, -inf }
 0x24d   :  { %290 = vmax.xlane.f32.xlu1 %v289_v52  ;;  %v286_v53 = vpop.f32.mrb[10].mxu1 }
 0x24e   :  { %v2820_v54 = vpop.f32.mrb[11].mxu1 }
 0x253   :  { %v393_v55 = vpop.f32.mrb[12].mxu1 }
 0x254   :  { %v2831_v56 = vpop.f32.mrb[13].mxu1  ;;  %v399_v57 = vsel %vm130_vm2, %v393_v55, -inf }
 0x255   :  { %400 = vmax.xlane.f32.xlu0 %v399_v57  ;;  %v396_v58 = vpop.f32.mrb[14].mxu1 }
 0x256   :  { %v2832_v59 = vpop.f32.mrb[15].mxu1 }
 0x25b   :  { %v3428_v60 = vpop.f32.mrb[16].mxu1 }
 0x25c   :  { %v2843_v61 = vpop.f32.mrb[17].mxu1  ;;  %v509_v62 = vsel %vm130_vm2, %v3428_v60, -inf }
 0x25d   :  { %510 = vmax.xlane.f32.xlu0 %v509_v62  ;;  %v506_v63 = vpop.f32.mrb[18].mxu1 }
 0x25e   :  { %v2844_v1 = vpop.f32.mrb[19].mxu1 }
 0x263   :  { %v3432_v2 = vpop.f32.mrb[20].mxu1 }
 0x264   :  { %v2855_v5 = vpop.f32.mrb[21].mxu1  ;;  %v638_v6 = vsel %vm130_vm2, %v3432_v2, -inf }
 0x265   :  { %639 = vmax.xlane.f32.xlu1 %v638_v6  ;;  %v635_v10 = vpop.f32.mrb[22].mxu1 }
 0x266   :  { %v2856_v11 = vpop.f32.mrb[23].mxu1 }
 0x26b   :  { %v3436_v12 = vpop.f32.mrb[24].mxu1 }
 0x26c   :  { %v2867_v13 = vpop.f32.mrb[25].mxu1  ;;  %v749_v14 = vsel %vm130_vm2, %v3436_v12, -inf }
 0x26d   :  { %750 = vmax.xlane.f32.xlu0 %v749_v14  ;;  %v746_v15 = vpop.f32.mrb[26].mxu1 }
 0x26e   :  { %v2868_v17 = vpop.f32.mrb[27].mxu1 }
 0x273   :  { %v853_v18 = vpop.f32.mrb[28].mxu1 }
 0x274   :  { %v2879_v19 = vpop.f32.mrb[29].mxu1  ;;  %v859_v20 = vsel %vm130_vm2, %v853_v18, -inf }
 0x275   :  { %860 = vmax.xlane.f32.xlu1 %v859_v20  ;;  %v856_v22 = vpop.f32.mrb[30].mxu1 }
 0x276   :  { %v2880_v23 = vpop.f32.mrb[31].mxu1 }
 0x27b   :  { %v3441_v24 = vpop.f32.mrb[32].mxu1 }
 0x27c   :  { %v2891_v25 = vpop.f32.mrb[33].mxu1  ;;  %v969_v28 = vsel %vm130_vm2, %v3441_v24, -inf }
 0x27d   :  { %v966_v26 = vpop.f32.mrb[34].mxu1 }
 0x27e   :  { %v2892_v27 = vpop.f32.mrb[35].mxu1 }
 0x283   :  { %301 = vrot.lane.b32.xlu0 %v3359_v16, %s3268_s23 }
 0x286   :  { %189 = vrot.lane.b32.xlu1 %v3359_v16, %s3269_s24 }
 0x2a2   :  { %970 = vmax.xlane.f32.xlu0 %v969_v28 }
 0x2d2   :  { %v179_v29 = vpop.xlane.xlu0 %178 }
 0x2d3   :  { %v180_v30 = vsub.f32 %v171_v45, %v179_v29 }
 0x2d5   :  { %v181_v31 = vmul.f32 1.442695, %v180_v30 }
 0x2d7   :  { %3128 = vpow2.f32 %v181_v31 }
 0x2da   :  { %v291_v32 = vpop.xlane.xlu1 %290 }
 0x2db   :  { %v292_v33 = vsub.f32 %v283_v50, %v291_v32 }
 0x2dd   :  { %v293_v34 = vmul.f32 1.442695, %v292_v33 }
 0x2df   :  { %3130 = vpow2.f32 %v293_v34 }
 0x2e1   :  { %v3449_v35 = vpop.eup %3128 }
 0x2e2   :  { %v401_v36 = vpop.xlane.xlu0 %400  ;;  %v183_v37 = vsel %vm130_vm2, %v3449_v35, 0.0 }
 0x2e3   :  { %v402_v38 = vsub.f32 %v393_v55, %v401_v36  ;;  %184 = vadd.xlane.f32.xlu1 %v183_v37 }
 0x2e5   :  { %v403_v39 = vmul.f32 1.442695, %v402_v38 }
 0x2e7   :  { %3132 = vpow2.f32 %v403_v39 }
 0x2e9   :  { %v3453_v40 = vpop.eup %3130 }
 0x2ea   :  { %v295_v41 = vsel %vm130_vm2, %v3453_v40, 0.0  ;;  %v511_v47 = vpop.xlane.xlu0 %510 }
 0x2eb   :  { %296 = vadd.xlane.f32.xlu0 %v295_v41  ;;  %v512_v49 = vsub.f32 %v3428_v60, %v511_v47 }
 0x2ed   :  { %v513_v50 = vmul.f32 1.442695, %v512_v49 }
 0x2ef   :  { %3134 = vpow2.f32 %v513_v50 }
 0x2f1   :  { %v3457_v42 = vpop.eup %3132 }
 0x2f2   :  { %v405_v43 = vsel %vm130_vm2, %v3457_v42, 0.0  ;;  %v640_v44 = vpop.xlane.xlu1 %639 }
 0x2f3   :  { %406 = vadd.xlane.f32.xlu1 %v405_v43  ;;  %v641_v51 = vsub.f32 %v3432_v2, %v640_v44 }
 0x2f5   :  { %v642_v54 = vmul.f32 1.442695, %v641_v51 }
 0x2f7   :  { %3136 = vpow2.f32 %v642_v54 }
 0x2f9   :  { %v3135_v57 = vpop.eup %3134 }
 0x2fa   :  { %v751_v52 = vpop.xlane.xlu0 %750  ;;  %v515_v58 = vsel %vm130_vm2, %v3135_v57, 0.0 }
 0x2fb   :  { %v752_v53 = vsub.f32 %v3436_v12, %v751_v52 }
 0x2fe   :  { %v302_v2 = vpop.permute.xlu0 %301 }
 0x2ff   :  { %v307_v19 = vsel %vm194_vm3, %v302_v2, 0 }
 0x301   :  { %411 = vrot.lane.b32.xlu0 %v3359_v16, %s3270_s25  ;;  %v3471_v59 = vpop.eup %3136 }
 0x302   :  { %v861_v45 = vpop.xlane.xlu1 %860  ;;  %v644_v61 = vsel %vm130_vm2, %v3471_v59, 0.0 }
 0x303   :  { %v862_v55 = vsub.f32 %v853_v18, %v861_v45 }
 0x304   :  { %521 = vrot.lane.b32.xlu1 %v3359_v16, %s3271_s26  ;;  %v753_v16 = vmul.f32 1.442695, %v752_v53 }
 0x305   :  { %v863_v56 = vmul.f32 1.442695, %v862_v55 }
 0x306   :  { %v190_v46 = vpop.permute.xlu1 %189  ;;  %3138 = vpow2.f32 %v753_v16 }
 0x307   :  { %v196_v48 = vsel %vm194_vm3, %v190_v46, 0  ;;  %3140 = vpow2.f32 %v863_v56 }
 0x308   :  { %2810 = vmatpush3.bf16.msra.mxu0 %v196_v48 }
 0x309   :  { %2821 = vmatprep.subr.bf16.mxu0 %v3259_v0 }
 0x310   :  { %v3473_v60 = vpop.eup %3138 }
 0x311   :  { %v3477_v62 = vpop.eup %3140  ;;  %v755_v63 = vsel %vm130_vm2, %v3473_v60, 0.0 }
 0x312   :  { %v865_v1 = vsel %vm130_vm2, %v3477_v62, 0.0 }
 0x320   :  { %516 = vadd.xlane.f32.xlu0 %v515_v58 }
 0x324   :  { %645 = vadd.xlane.f32.xlu0 %v644_v61 }
 0x328   :  { %756 = vadd.xlane.f32.xlu1 %v755_v63  ;;  %866 = vadd.xlane.f32.xlu0 %v865_v1 }
 0x32f   :  { %v971_v5 = vpop.xlane.xlu0 %970 }
 0x330   :  { %v972_v6 = vsub.f32 %v3441_v24, %v971_v5 }
 0x332   :  { %v973_v10 = vmul.f32 1.442695, %v972_v6 }
 0x334   :  { %3142 = vpow2.f32 %v973_v10 }
 0x339   :  { %761 = vrot.lane.b32.xlu1 %v3371_v21, %s3268_s23 }
 0x33d   :  { %871 = vrot.lane.b32.xlu1 %v3371_v21, %s3270_s25 }
 0x33e   :  { %v3488_v11 = vpop.eup %3142 }
 0x33f   :  { %v975_v12 = vsel %vm130_vm2, %v3488_v11, 0.0 }
 0x340   :  { %976 = vadd.xlane.f32.xlu0 %v975_v12 }
 0x341   :  { %981 = vrot.lane.b32.xlu1 %v3371_v21, %s3271_s26 }
 0x356   :  { %650 = vrot.lane.b32.xlu0 %v3371_v21, %s3269_s24 }
 0x370   :  { %v185_v13 = vpop.xlane.xlu1 %184 }
 0x371   :  { %3144 = vrcp.f32 %v185_v13 }
 0x378   :  { %v297_v14 = vpop.xlane.xlu0 %296 }
 0x379   :  { %3146 = vrcp.f32 %v297_v14 }
 0x37b   :  { %v3145_v15 = vpop.eup %3144 }
 0x37c   :  { %v187_v17 = vmul.f32 %v3145_v15, %v3449_v35  ;;  %v412_v23 = vpop.permute.xlu0 %411 }
 0x37d   :  { %v417_v25 = vsel %vm194_vm3, %v412_v23, 0 }
 0x37e   :  { %v188_v18 = vpack.c.bf16 %v187_v17, %v187_v17 }
 0x380   :  { %2812 = vmatmul.mubr.msk.bf16.vlgmr.msra.gmra.mrb[0].mxu0 %vm130_vm2, %v188_v18  ;;  %v407_v20 = vpop.xlane.xlu1 %406 }
 0x381   :  { %2822 = vmatpush3.bf16.msra.mxu0 %v307_v19  ;;  %3148 = vrcp.f32 %v407_v20  ;;  %2823 = vmatprep.mubr.msk.bf16.mxu0 %vm3260_vm0, %v3259_v0 }
 0x382   :  { %2833 = vmatprep.subr.bf16.mxu0 %v3259_v0 }
 0x383   :  { %v3147_v21 = vpop.eup %3146 }
 0x384   :  { %v299_v22 = vmul.f32 %v3147_v21, %v3453_v40  ;;  %v522_v28 = vpop.permute.xlu1 %521 }
 0x385   :  { %v527_v30 = vsel %vm194_vm3, %v522_v28, 0 }
 0x386   :  { %v300_v24 = vpack.c.bf16 %v299_v22, %v299_v22  ;;  %v3110_v22 = vld [vmem:[%s3926_s2] sm:$0xff]  }
 0x387   :  { %2900 = vmatpush3.bf16.msra.mxu1 %v3110_v22 }
 0x388   :  { %2824 = vmatmul.mubr.msk.bf16.vlgmr.msra.gmra.mrb[4].mxu0 %vm130_vm2, %v300_v24  ;;  %2901 = vmatprep.subr.bf16.mxu1 %v3259_v0 }
 0x389   :  { %2834 = vmatpush3.bf16.msra.mxu0 %v417_v25  ;;  %2835 = vmatprep.mubr.msk.bf16.mxu0 %vm3260_vm0, %v3259_v0 }
 0x38a   :  { %2845 = vmatprep.subr.bf16.mxu0 %v3259_v0 }
 0x38b   :  { %v3149_v26 = vpop.eup %3148 }
 0x38c   :  { %v409_v27 = vmul.f32 %v3149_v26, %v3457_v42 }
 0x38e   :  { %v410_v29 = vpack.c.bf16 %v409_v27, %v409_v27  ;;  %v3111_v27 = vld [vmem:[%s3926_s2 + $0x8] sm:$0xff]  }
 0x38f   :  { %2902 = vmatpush3.bf16.msra.mxu1 %v3111_v27 }
 0x390   :  { %2836 = vmatmul.mubr.msk.bf16.vlgmr.msra.gmra.mrb[8].mxu0 %vm130_vm2, %v410_v29  ;;  %2915 = vmatprep.subr.bf16.mxu1 %v3259_v0 }
 0x391   :  { %2846 = vmatpush3.bf16.msra.mxu0 %v527_v30  ;;  %2847 = vmatprep.mubr.msk.bf16.mxu0 %vm3260_vm0, %v3259_v0 }
 0x392   :  { %2857 = vmatprep.subr.bf16.mxu0 %v3259_v0 }
 0x3ad   :  { %v517_v31 = vpop.xlane.xlu0 %516 }
 0x3ae   :  { %3150 = vrcp.f32 %v517_v31 }
 0x3b1   :  { %v646_v35 = vpop.xlane.xlu0 %645 }
 0x3b2   :  { %3152 = vrcp.f32 %v646_v35 }
 0x3b5   :  { %v757_v36 = vpop.xlane.xlu1 %756  ;;  %v867_v37 = vpop.xlane.xlu0 %866 }
 0x3b6   :  { %3154 = vrcp.f32 %v757_v36 }
 0x3b7   :  { %3156 = vrcp.f32 %v867_v37 }
 0x3b8   :  { %v3151_v32 = vpop.eup %3150 }
 0x3b9   :  { %v519_v33 = vmul.f32 %v3151_v32, %v3135_v57  ;;  %v762_v43 = vpop.permute.xlu1 %761 }
 0x3ba   :  { %v767_v46 = vsel %vm194_vm3, %v762_v43, 0 }
 0x3bb   :  { %v520_v34 = vpack.c.bf16 %v519_v33, %v519_v33 }
 0x3bc   :  { %v3153_v38 = vpop.eup %3152 }
 0x3bd   :  { %2848 = vmatmul.mubr.msk.bf16.vlgmr.msra.gmra.mrb[12].mxu0 %vm130_vm2, %v520_v34  ;;  %v648_v40 = vmul.f32 %v3153_v38, %v3471_v59  ;;  %v872_v48 = vpop.permute.xlu1 %871 }
 0x3be   :  { %2859 = vmatprep.mubr.msk.bf16.mxu0 %vm3260_vm0, %v3259_v0  ;;  %v877_v51 = vsel %vm194_vm3, %v872_v48, 0 }
 0x3bf   :  { %v649_v44 = vpack.c.bf16 %v648_v40, %v648_v40 }
 0x3c0   :  { %v3155_v45 = vpop.eup %3154 }
 0x3c1   :  { %v759_v47 = vmul.f32 %v3155_v45, %v3473_v60  ;;  %v3157_v50 = vpop.eup %3156  ;;  %v982_v53 = vpop.permute.xlu1 %981 }
 0x3c2   :  { %v869_v52 = vmul.f32 %v3157_v50, %v3477_v62  ;;  %v987_v16 = vsel %vm194_vm3, %v982_v53, 0 }
 0x3c3   :  { %v760_v49 = vpack.c.bf16 %v759_v47, %v759_v47 }
 0x3c4   :  { %v870_v54 = vpack.c.bf16 %v869_v52, %v869_v52 }
 0x3cd   :  { %v977_v39 = vpop.xlane.xlu0 %976 }
 0x3ce   :  { %3158 = vrcp.f32 %v977_v39 }
 0x3d1   :  { %v651_v41 = vpop.permute.xlu0 %650 }
 0x3d2   :  { %v656_v42 = vsel %vm194_vm3, %v651_v41, 0 }
 0x3d3   :  { %2858 = vmatpush3.bf16.msra.mxu0 %v656_v42 }
 0x3d4   :  { %2869 = vmatprep.subr.bf16.mxu0 %v3259_v0 }
 0x3d6   :  { %2860 = vmatmul.mubr.msk.bf16.vlgmr.msra.gmra.mrb[16].mxu0 %vm130_vm2, %v649_v44 }
 0x3d7   :  { %2870 = vmatpush3.bf16.msra.mxu0 %v767_v46  ;;  %2871 = vmatprep.mubr.msk.bf16.mxu0 %vm3260_vm0, %v3259_v0 }
 0x3d8   :  { %2881 = vmatprep.subr.bf16.mxu0 %v3259_v0  ;;  %v3159_v55 = vpop.eup %3158 }
 0x3d9   :  { %v979_v56 = vmul.f32 %v3159_v55, %v3488_v11 }
 0x3db   :  { %v980_v57 = vpack.c.bf16 %v979_v56, %v979_v56 }
 0x3de   :  { %2872 = vmatmul.mubr.msk.bf16.vlgmr.msra.gmra.mrb[20].mxu0 %vm130_vm2, %v760_v49 }
 0x3df   :  { %2882 = vmatpush3.bf16.msra.mxu0 %v877_v51  ;;  %2883 = vmatprep.mubr.msk.bf16.mxu0 %vm3260_vm0, %v3259_v0 }
 0x3e0   :  { %2893 = vmatprep.subr.bf16.mxu0 %v3259_v0 }
 0x3e6   :  { %2884 = vmatmul.mubr.msk.bf16.vlgmr.msra.gmra.mrb[24].mxu0 %vm130_vm2, %v870_v54  ;;  %v1047_v54 = vsub.s32 1, %v3348_v7 }
 0x3e7   :  { %2894 = vmatpush3.bf16.msra.mxu0 %v987_v16  ;;  %2895 = vmatprep.mubr.msk.bf16.mxu0 %vm3260_vm0, %v3259_v0 }
 0x3e8   :  { %2907 = vmatprep.subr.bf16.mxu0 %v3259_v0  ;;  %v1048_v55 = vrot.slane %v3354_v9, %v1047_v54 }
 0x3ee   :  { %2896 = vmatmul.mubr.msk.bf16.vlgmr.msra.gmra.mrb[28].mxu0 %vm130_vm2, %v980_v57 }
 0x3ef   :  { %2911 = vmatprep.mubr.msk.bf16.mxu0 %vm3260_vm0, %v3259_v0 }
 0x453   :  { %v232_v58 = vpop.f32.mrb[0].mxu0 }
 0x454   :  { %v2813_v59 = vpop.f32.mrb[1].mxu0 }
 0x455   :  { %v235_v60 = vpop.f32.mrb[2].mxu0 }
 0x456   :  { %v2814_v61 = vpop.f32.mrb[3].mxu0 }
 0x45b   :  { %v343_v62 = vpop.f32.mrb[4].mxu0 }
 0x45c   :  { %v2825_v63 = vpop.f32.mrb[5].mxu0 }
 0x45d   :  { %v346_v1 = vpop.f32.mrb[6].mxu0 }
 0x45e   :  { %v2826_v2 = vpop.f32.mrb[7].mxu0 }
 0x463   :  { %v453_v5 = vpop.f32.mrb[8].mxu0 }
 0x464   :  { %v2837_v6 = vpop.f32.mrb[9].mxu0 }
 0x465   :  { %v456_v10 = vpop.f32.mrb[10].mxu0 }
 0x466   :  { %v2838_v11 = vpop.f32.mrb[11].mxu0 }
 0x490   :  { %v563_v12 = vpop.f32.mrb[12].mxu0 }
 0x491   :  { %v2849_v13 = vpop.f32.mrb[13].mxu0 }
 0x492   :  { %v566_v14 = vpop.f32.mrb[14].mxu0 }
 0x493   :  { %v2850_v15 = vpop.f32.mrb[15].mxu0 }
 0x4a9   :  { %v692_v17 = vpop.f32.mrb[16].mxu0 }
 0x4aa   :  { %v2861_v18 = vpop.f32.mrb[17].mxu0 }
 0x4ab   :  { %v695_v19 = vpop.f32.mrb[18].mxu0  ;;  %v3114_v18 = vld [vmem:[%s3928_s4] sm:$0xff]  }
 0x4ac   :  { %v2862_v20 = vpop.f32.mrb[19].mxu0  ;;  %v3115_v19 = vld [vmem:[%s3928_s4 + $0x8] sm:$0xff]  }
 0x4b1   :  { %v803_v21 = vpop.f32.mrb[20].mxu0 }
 0x4b2   :  { %v3078_v23 = vpack.i.bf16 %v803_v21, %v343_v62  ;;  %v2873_v24 = vpop.f32.mrb[21].mxu0 }
 0x4b3   :  { %v806_v25 = vpop.f32.mrb[22].mxu0 }
 0x4b4   :  { %3079 = vrot.lane.b32.xlu1 %v3078_v23, %s3258_s8  ;;  %v2874_v26 = vpop.f32.mrb[23].mxu0 }
 0x4b5   :  { %v1136_v26 = vsub.s32 4, %v3348_v7 }
 0x4b7   :  { %v1137_v27 = vrot.slane %v3354_v9, %v1136_v26 }
 0x4b9   :  { %v913_v28 = vpop.f32.mrb[24].mxu0 }
 0x4ba   :  { %v3083_v29 = vpack.i.bf16 %v913_v28, %v453_v5  ;;  %v2885_v30 = vpop.f32.mrb[25].mxu0  ;;  %v1142_v28 = vsub.s32 5, %v3348_v7 }
 0x4bb   :  { %v916_v31 = vpop.f32.mrb[26].mxu0 }
 0x4bc   :  { %3084 = vrot.lane.b32.xlu1 %v3083_v29, %s3272_s9  ;;  %v2886_v32 = vpop.f32.mrb[27].mxu0 }
 0x4c1   :  { %v1023_v33 = vpop.f32.mrb[28].mxu0 }
 0x4c2   :  { %v3088_v34 = vpack.i.bf16 %v1023_v33, %v563_v12  ;;  %v2897_v35 = vpop.f32.mrb[29].mxu0 }
 0x4c3   :  { %v1026_v36 = vpop.f32.mrb[30].mxu0 }
 0x4c4   :  { %3089 = vrot.lane.b32.xlu0 %v3088_v34, %s3273_s10  ;;  %v2898_v37 = vpop.f32.mrb[31].mxu0  ;;  %v1143_v34 = vrot.slane %v3354_v9, %v1142_v28 }
 0x526   :  { %v3080_v38 = vpop.permute.xlu1 %3079 }
 0x527   :  { %v3082_v40 = vunpack.i.h.bf16 %v3080_v38  ;;  %v3081_v41 = vunpack.i.l.bf16 %v3080_v38 }
 0x529   :  { %v1041_v45 = vsel %vm130_vm2, %v692_v17, %v3082_v40  ;;  %v581_v46 = vsel %vm130_vm2, %v232_v58, %v3081_v41  ;;  %v3113_v17 = vld [vmem:[%s3927_s3 + $0x8] sm:$0xff]   ;;  %v3117_v40 = vld [vmem:[%s3928_s4 + $0x18] sm:$0xff]   ;;  %v1149_v41 = vsub.s32 2, %v3348_v7 }
 0x52e   :  { %v3085_v39 = vpop.permute.xlu1 %3084 }
 0x52f   :  { %v3087_v42 = vunpack.i.h.bf16 %v3085_v39  ;;  %v3086_v43 = vunpack.i.l.bf16 %v3085_v39  ;;  %v3116_v39 = vld [vmem:[%s3928_s4 + $0x10] sm:$0xff]  }
 0x531   :  { %v1042_v49 = vsel %vm582_vm4, %v1041_v45, %v3087_v42  ;;  %v583_v50 = vsel %vm582_vm4, %v581_v46, %v3086_v43  ;;  %v1150_v42 = vrot.slane %v3354_v9, %v1149_v41 }
 0x536   :  { %v3090_v44 = vpop.permute.xlu0 %3089 }
 0x537   :  { %v3092_v47 = vunpack.i.h.bf16 %v3090_v44  ;;  %v3091_v48 = vunpack.i.l.bf16 %v3090_v44 }
 0x539   :  { %v1043_v51 = vsel %vm584_vm5, %v1042_v49, %v3092_v47  ;;  %v585_v52 = vsel %vm584_vm5, %v583_v50, %v3091_v48 }
 0x53a   :  { %v1044_v53 = vpack.c.bf16 %v1043_v51, %v585_v52  ;;  %v1212_v52 = vsub.s32 3, %v3348_v7 }
 0x53c   :  { %2904 = vmatmul.mubr.msk.bf16.vlgmr.msra.gmra.mrb[36].mxu1 %vm79_vm1, %v1044_v53  ;;  %v1213_v53 = vrot.slane %v3354_v9, %v1212_v52 }
 0x53d   :  { %2923 = vmatprep.mubr.msk.bf16.mxu1 %vm3260_vm0, %v3259_v0  ;;  %2916 = vmatpush3.bf16.msra.mxu1 %v3114_v18 }
 0x53e   :  { %2917 = vmatprep.subr.bf16.mxu1 %v3259_v0 }
 0x541   :  { %2918 = vmatpush3.bf16.msra.mxu1 %v3115_v19 }
 0x542   :  { %2919 = vmatprep.subr.bf16.mxu1 %v3259_v0 }
 0x545   :  { %2920 = vmatpush3.bf16.msra.mxu1 %v3116_v39 }
 0x546   :  { %2921 = vmatprep.subr.bf16.mxu1 %v3259_v0 }
 0x549   :  { %2922 = vmatpush3.bf16.msra.mxu1 %v3117_v40 }
 0x54a   :  { %2941 = vmatprep.subr.bf16.mxu1 %v3259_v0 }
 0x60f   :  { %v1098_v16 = vpop.f32.mrb[36].mxu1 }
 0x610   :  { %v1099_v56 = vadd.f32 %v1098_v16, %v1048_v55  ;;  %v2905_v57 = vpop.f32.mrb[37].mxu1 }
 0x611   :  { %v1101_v58 = vpop.f32.mrb[38].mxu1 }
 0x612   :  { %v1102_v59 = vadd.f32 %v1101_v58, %v1048_v55  ;;  %v2906_v60 = vpop.f32.mrb[39].mxu1  ;;  %v1105_v61 = vadd.f32 %v1099_v56, %v3337_v3 }
 0x614   :  { %v1107_v62 = vsel %vm79_vm1, %v1105_v61, 0.0  ;;  %v1106_v63 = vadd.f32 %v1102_v59, %v3339_v4  ;;  %v3112_v4 = vld [vmem:[%s3927_s3] sm:$0xff]  }
 0x615   :  { %1108 = vadd.xlane.f32.xlu1 %v1107_v62  ;;  %2908 = vmatpush3.bf16.msra.mxu0 %v3112_v4  ;;  %v3119_v4 = vld [vmem:[%s3925_s1 + $0x18] sm:$0xff]  }
 0x616   :  { %v1110_v1 = vsel %vm79_vm1, %v1106_v63, 0.0  ;;  %2909 = vmatprep.subr.bf16.mxu0 %v3259_v0 }
 0x617   :  { %1111 = vadd.xlane.f32.xlu0 %v1110_v1 }
 0x619   :  { %2910 = vmatpush3.bf16.msra.mxu0 %v3113_v17 }
 0x61a   :  { %2927 = vmatprep.subr.bf16.mxu0 %v3259_v0 }
 0x6a2   :  { %v1109_v2 = vpop.xlane.xlu1 %1108 }
 0x6a3   :  { %v1114_v5 = vmul.f32 0.03125, %v1109_v2 }
 0x6a4   :  { %v1112_v6 = vpop.xlane.xlu0 %1111 }
 0x6a5   :  { %v1116_v10 = vsub.f32 %v1105_v61, %v1114_v5  ;;  %v1115_v11 = vmul.f32 0.03125, %v1112_v6 }
 0x6a7   :  { %v1117_v12 = vsub.f32 %v1106_v63, %v1115_v11  ;;  %v1118_v13 = vmul.f32 %v1116_v10, %v1116_v10 }
 0x6a9   :  { %v1120_v14 = vsel %vm79_vm1, %v1118_v13, 0.0  ;;  %v1119_v15 = vmul.f32 %v1117_v12, %v1117_v12 }
 0x6aa   :  { %1121 = vadd.xlane.f32.xlu0 %v1120_v14 }
 0x6ab   :  { %v1123_v3 = vsel %vm79_vm1, %v1119_v15, 0.0 }
 0x6ac   :  { %1124 = vadd.xlane.f32.xlu1 %v1123_v3  ;;  %v3118_v3 = vld [vmem:[%s3925_s1 + $0x10] sm:$0xff]  }
 0x737   :  { %v1122_v20 = vpop.xlane.xlu0 %1121 }
 0x738   :  { %v1126_v21 = vmul.f32 0.03125, %v1122_v20 }
 0x739   :  { %v1125_v22 = vpop.xlane.xlu1 %1124 }
 0x73a   :  { %v1128_v23 = vadd.f32 1e-05, %v1126_v21  ;;  %v1127_v24 = vmul.f32 0.03125, %v1125_v22 }
 0x73c   :  { %3160 = vrsqrt.f32 %v1128_v23  ;;  %v1129_v25 = vadd.f32 1e-05, %v1127_v24  ;;  %v1313_v23 = vsub.s32 6, %v3348_v7 }
 0x73e   :  { %3162 = vrsqrt.f32 %v1129_v25  ;;  %v1314_v24 = vrot.slane %v3354_v9, %v1313_v23  ;;  %v1319_v25 = vsub.s32 7, %v3348_v7 }
 0x746   :  { %v3161_v29 = vpop.eup %3160 }
 0x747   :  { %v1132_v30 = vmul.f32 %v3161_v29, %v1116_v10 }
 0x748   :  { %v3163_v31 = vpop.eup %3162 }
 0x749   :  { %v1138_v32 = vmul.f32 %v1137_v27, %v1132_v30  ;;  %v1133_v33 = vmul.f32 %v3163_v31, %v1117_v12 }
 0x74b   :  { %v1139_v35 = vmul.f32 %v1137_v27, %v1133_v33  ;;  %v1144_v36 = vadd.f32 %v1143_v34, %v1138_v32  ;;  %v1320_v33 = vrot.slane %v3354_v9, %v1319_v25 }
 0x74d   :  { %v1145_v37 = vadd.f32 %v1143_v34, %v1139_v35 }
 0x74f   :  { %v1146_v38 = vpack.c.bf16 %v1145_v37, %v1144_v36 }
 0x751   :  { %2912 = vmatmul.mubr.msk.bf16.vlgmr.msra.gmra.mrb[32].mxu0 %vm79_vm1, %v1146_v38  ;;  %v3649_v38 = vld [vmem:[%s3929_s5 + $0x8] sm:$0xff] }
 0x752   :  { %2931 = vmatprep.mubr.msk.bf16.mxu0 %vm3260_vm0, %v3259_v0  ;;  %2928 = vmatpush3.bf16.msra.mxu0 %v3118_v3  ;;  %v1353_v9 = vrot.slane %v3649_v38, %v65_v8 }
 0x753   :  { %2929 = vmatprep.subr.bf16.mxu0 %v3259_v0 }
 0x756   :  { %2930 = vmatpush3.bf16.msra.mxu0 %v3119_v4 }
 0x757   :  { %2935 = vmatprep.subr.bf16.mxu0 %v3259_v0 }
 0x824   :  { %v1200_v43 = vpop.f32.mrb[32].mxu0 }
 0x825   :  { %v1201_v44 = vadd.f32 %v1200_v43, %v1150_v42  ;;  %v2913_v45 = vpop.f32.mrb[33].mxu0 }
 0x826   :  { %v1203_v46 = vpop.f32.mrb[34].mxu0 }
 0x827   :  { %v1204_v47 = vadd.f32 %v1203_v46, %v1150_v42  ;;  %v2914_v48 = vpop.f32.mrb[35].mxu0  ;;  %v1207_v49 = vmax.f32 %v1201_v44, 0.0 }
 0x829   :  { %v1208_v50 = vmax.f32 %v1204_v47, 0.0 }
 0x82b   :  { %v1209_v51 = vpack.c.bf16 %v1208_v50, %v1207_v49 }
 0x82d   :  { %2924 = vmatmul.mubr.msk.bf16.vlgmr.msra.gmra.mrb[40].mxu1 %vm1238_vm6, %v1209_v51 }
 0x82e   :  { %2943 = vmatprep.mubr.msk.bf16.mxu1 %vm3260_vm0, %v3259_v0 }
 0x900   :  { %v1276_v55 = vpop.f32.mrb[40].mxu1 }
 0x901   :  { %v1277_v16 = vadd.f32 %v1276_v55, %v1213_v53  ;;  %v2925_v56 = vpop.f32.mrb[41].mxu1 }
 0x902   :  { %v1279_v57 = vpop.f32.mrb[42].mxu1 }
 0x903   :  { %v1280_v58 = vadd.f32 %v1279_v57, %v1213_v53  ;;  %v2926_v59 = vpop.f32.mrb[43].mxu1  ;;  %v1283_v60 = vadd.f32 %v1277_v16, %v1144_v36 }
 0x905   :  { %v1285_v61 = vsel %vm79_vm1, %v1283_v60, 0.0  ;;  %v1284_v62 = vadd.f32 %v1280_v58, %v1145_v37 }
 0x906   :  { %1286 = vadd.xlane.f32.xlu0 %v1285_v61 }
 0x907   :  { %v1288_v63 = vsel %vm79_vm1, %v1284_v62, 0.0 }
 0x908   :  { %1289 = vadd.xlane.f32.xlu1 %v1288_v63 }
 0x993   :  { %v1287_v1 = vpop.xlane.xlu0 %1286 }
 0x994   :  { %v1291_v2 = vmul.f32 0.03125, %v1287_v1 }
 0x995   :  { %v1290_v5 = vpop.xlane.xlu1 %1289 }
 0x996   :  { %v1293_v6 = vsub.f32 %v1283_v60, %v1291_v2  ;;  %v1292_v10 = vmul.f32 0.03125, %v1290_v5 }
 0x998   :  { %v1294_v11 = vsub.f32 %v1284_v62, %v1292_v10  ;;  %v1295_v12 = vmul.f32 %v1293_v6, %v1293_v6 }
 0x99a   :  { %v1297_v13 = vsel %vm79_vm1, %v1295_v12, 0.0  ;;  %v1296_v14 = vmul.f32 %v1294_v11, %v1294_v11 }
 0x99b   :  { %1298 = vadd.xlane.f32.xlu0 %v1297_v13 }
 0x99c   :  { %v1300_v15 = vsel %vm79_vm1, %v1296_v14, 0.0 }
 0x99d   :  { %1301 = vadd.xlane.f32.xlu1 %v1300_v15 }
 0xa28   :  { %v1299_v17 = vpop.xlane.xlu0 %1298 }
 0xa29   :  { %v1303_v18 = vmul.f32 0.03125, %v1299_v17 }
 0xa2a   :  { %v1302_v19 = vpop.xlane.xlu1 %1301 }
 0xa2b   :  { %v1305_v20 = vadd.f32 1e-05, %v1303_v18  ;;  %v1304_v21 = vmul.f32 0.03125, %v1302_v19 }
 0xa2d   :  { %3164 = vrsqrt.f32 %v1305_v20  ;;  %v1306_v22 = vadd.f32 1e-05, %v1304_v21 }
 0xa2f   :  { %3166 = vrsqrt.f32 %v1306_v22 }
 0xa37   :  { %v3165_v27 = vpop.eup %3164 }
 0xa38   :  { %v1309_v29 = vmul.f32 %v3165_v27, %v1293_v6 }
 0xa39   :  { %v3167_v30 = vpop.eup %3166 }
 0xa3a   :  { %v1315_v31 = vmul.f32 %v1314_v24, %v1309_v29  ;;  %v1310_v32 = vmul.f32 %v3167_v30, %v1294_v11 }
 0xa3c   :  { %v1316_v34 = vmul.f32 %v1314_v24, %v1310_v32  ;;  %v3637_v35 = vadd.f32 %v1320_v33, %v1315_v31 }
 0xa3e   :  { %v3639_v36 = vadd.f32 %v1320_v33, %v1316_v34 }
 0xa40   :  { %v1349_v37 = vpack.c.bf16 %v3639_v36, %v3637_v35 }
 0xa42   :  { %2932 = vmatmul.mubr.msk.bf16.vlgmr.msra.gmra.mrb[36].mxu0 %vm79_vm1, %v1349_v37 }
 0xa43   :  { %2937 = vmatprep.mubr.msk.bf16.mxu0 %vm3260_vm0, %v3259_v0 }
 0xb15   :  { %v1403_v39 = vpop.f32.mrb[36].mxu0 }
 0xb16   :  { %v1404_v40 = vadd.f32 %v1403_v39, %v1353_v9  ;;  %v2933_v42 = vpop.f32.mrb[37].mxu0 }
 0xb17   :  { %v1406_v43 = vpop.f32.mrb[38].mxu0 }
 0xb18   :  { %v1410_v44 = vmul.f32 0.35355338, %v1404_v40  ;;  %v3654_v45 = vpack.c.bf16 %v1404_v40, %v1404_v40  ;;  %v2934_v46 = vpop.f32.mrb[39].mxu0  ;;  %v1407_v8 = vadd.f32 %v1406_v43, %v1353_v9 }
 0xb1a   :  { %1525 = vrot.lane.b32.xlu1 %v3654_v45, %s3263_s18  ;;  %1414 = vrot.lane.b32.xlu0 %v3654_v45, %s3261_s16  ;;  %v1411_v47 = vpack.c.bf16 %v1410_v44, %v1410_v44  ;;  %v1868_v48 = vmul.f32 0.35355338, %v1407_v8  ;;  %v3666_v49 = vpack.c.bf16 %v1407_v8, %v1407_v8 }
 0xb1c   :  { %v1869_v50 = vpack.c.bf16 %v1868_v48, %v1868_v48 }
 0xb1e   :  { %1635 = vrot.lane.b32.xlu0 %v3654_v45, %s3264_s19  ;;  %1523 = vrot.lane.b32.xlu1 %v1411_v47, %s3262_s17 }
 0xb22   :  { %1745 = vrot.lane.b32.xlu0 %v3654_v45, %s3266_s21  ;;  %1633 = vrot.lane.b32.xlu1 %v1411_v47, %s3265_s20 }
 0xb26   :  { %1743 = vrot.lane.b32.xlu1 %v1411_v47, %s3267_s22  ;;  %1872 = vrot.lane.b32.xlu0 %v3666_v49, %s3261_s16 }
 0xb2a   :  { %1983 = vrot.lane.b32.xlu1 %v3666_v49, %s3263_s18  ;;  %1981 = vrot.lane.b32.xlu0 %v1869_v50, %s3262_s17 }
 0xb2e   :  { %2093 = vrot.lane.b32.xlu1 %v3666_v49, %s3264_s19  ;;  %2091 = vrot.lane.b32.xlu0 %v1869_v50, %s3265_s20 }
 0xb32   :  { %2203 = vrot.lane.b32.xlu1 %v3666_v49, %s3266_s21  ;;  %2201 = vrot.lane.b32.xlu0 %v1869_v50, %s3267_s22 }
 0xb8c   :  { %v1415_v51 = vpop.permute.xlu0 %1414  ;;  %v1526_v55 = vpop.permute.xlu1 %1525 }
 0xb8d   :  { %v1420_v53 = vsel %vm130_vm2, %v1415_v51, 0  ;;  %v1531_v16 = vsel %vm130_vm2, %v1526_v55, 0 }
 0xb8e   :  { %2936 = vmatpush3.bf16.xpose.msra.mxu0 %v1420_v53 }
 0xb8f   :  { %2947 = vmatprep.subr.bf16.mxu0 %v3259_v0 }
 0xb90   :  { %v1636_v56 = vpop.permute.xlu0 %1635  ;;  %v1524_v57 = vpop.permute.xlu1 %1523 }
 0xb91   :  { %v1641_v58 = vsel %vm130_vm2, %v1636_v56, 0 }
 0xb94   :  { %v1746_v59 = vpop.permute.xlu0 %1745  ;;  %v1634_v60 = vpop.permute.xlu1 %1633 }
 0xb95   :  { %2938 = vmatmul.mubr.msk.bf16.vlgmr.msra.gmra.mrb[40].mxu0 %vm130_vm2, %v1411_v47  ;;  %v1751_v61 = vsel %vm130_vm2, %v1746_v59, 0 }
 0xb96   :  { %2948 = vmatpush3.bf16.xpose.msra.mxu0 %v1531_v16  ;;  %2949 = vmatprep.mubr.msk.bf16.mxu0 %vm3260_vm0, %v3259_v0 }
 0xb97   :  { %2959 = vmatprep.subr.bf16.mxu0 %v3259_v0 }
 0xb98   :  { %v1873_v62 = vpop.permute.xlu0 %1872  ;;  %v1744_v63 = vpop.permute.xlu1 %1743 }
 0xb99   :  { %v1878_v1 = vsel %vm130_vm2, %v1873_v62, 0 }
 0xb9c   :  { %v1984_v2 = vpop.permute.xlu1 %1983  ;;  %v1982_v10 = vpop.permute.xlu0 %1981 }
 0xb9d   :  { %2950 = vmatmul.mubr.msk.bf16.vlgmr.msra.gmra.mrb[44].mxu0 %vm130_vm2, %v1524_v57  ;;  %v1989_v5 = vsel %vm130_vm2, %v1984_v2, 0 }
 0xb9e   :  { %2960 = vmatpush3.bf16.xpose.msra.mxu0 %v1641_v58  ;;  %2961 = vmatprep.mubr.msk.bf16.mxu0 %vm3260_vm0, %v3259_v0 }
 0xb9f   :  { %2971 = vmatprep.subr.bf16.mxu0 %v3259_v0 }
 0xba0   :  { %v2094_v6 = vpop.permute.xlu1 %2093  ;;  %v2092_v13 = vpop.permute.xlu0 %2091 }
 0xba1   :  { %v2099_v11 = vsel %vm130_vm2, %v2094_v6, 0 }
 0xba4   :  { %v2204_v12 = vpop.permute.xlu1 %2203  ;;  %v2202_v15 = vpop.permute.xlu0 %2201 }
 0xba5   :  { %2962 = vmatmul.mubr.msk.bf16.vlgmr.msra.gmra.mrb[48].mxu0 %vm130_vm2, %v1634_v60  ;;  %v2209_v14 = vsel %vm130_vm2, %v2204_v12, 0 }
 0xba6   :  { %2972 = vmatpush3.bf16.xpose.msra.mxu0 %v1751_v61  ;;  %2973 = vmatprep.mubr.msk.bf16.mxu0 %vm3260_vm0, %v3259_v0 }
 0xba7   :  { %2983 = vmatprep.subr.bf16.mxu0 %v3259_v0 }
 0xbad   :  { %2974 = vmatmul.mubr.msk.bf16.vlgmr.msra.gmra.mrb[52].mxu0 %vm130_vm2, %v1744_v63 }
 0xbae   :  { %2984 = vmatpush3.bf16.xpose.msra.mxu0 %v1878_v1  ;;  %2985 = vmatprep.mubr.msk.bf16.mxu0 %vm3260_vm0, %v3259_v0 }
 0xbaf   :  { %2995 = vmatprep.subr.bf16.mxu0 %v3259_v0 }
 0xbb5   :  { %2986 = vmatmul.mubr.msk.bf16.vlgmr.msra.gmra.mrb[56].mxu0 %vm130_vm2, %v1869_v50 }
 0xbb6   :  { %2996 = vmatpush3.bf16.xpose.msra.mxu0 %v1989_v5  ;;  %2997 = vmatprep.mubr.msk.bf16.mxu0 %vm3260_vm0, %v3259_v0 }
 0xbb7   :  { %3007 = vmatprep.subr.bf16.mxu0 %v3259_v0 }
 0xbbd   :  { %2998 = vmatmul.mubr.msk.bf16.vlgmr.msra.gmra.mrb[60].mxu0 %vm130_vm2, %v1982_v10 }
 0xbbe   :  { %3008 = vmatpush3.bf16.xpose.msra.mxu0 %v2099_v11  ;;  %3009 = vmatprep.mubr.msk.bf16.mxu0 %vm3260_vm0, %v3259_v0 }
 0xbbf   :  { %3019 = vmatprep.subr.bf16.mxu0 %v3259_v0 }
 0xbc5   :  { %3010 = vmatmul.mubr.msk.bf16.vlgmr.msra.gmra.mrb[64].mxu0 %vm130_vm2, %v2092_v13 }
 0xbc6   :  { %3020 = vmatpush3.bf16.xpose.msra.mxu0 %v2209_v14  ;;  %3021 = vmatprep.mubr.msk.bf16.mxu0 %vm3260_vm0, %v3259_v0 }
 0xbc7   :  { %3031 = vmatprep.subr.bf16.mxu0 %v3259_v0 }
 0xbcd   :  { %3022 = vmatmul.mubr.msk.bf16.vlgmr.msra.gmra.mrb[68].mxu0 %vm130_vm2, %v2202_v15 }
 0xbce   :  { %3035 = vmatprep.mubr.msk.bf16.mxu0 %vm3260_vm0, %v3259_v0 }
 0xc68   :  { %v1456_v3 = vpop.f32.mrb[40].mxu0 }
 0xc69   :  { %v2939_v4 = vpop.f32.mrb[41].mxu0  ;;  %v1462_v17 = vsel %vm130_vm2, %v1456_v3, -inf }
 0xc6a   :  { %1463 = vmax.xlane.f32.xlu1 %v1462_v17  ;;  %v1459_v18 = vpop.f32.mrb[42].mxu0 }
 0xc6b   :  { %v2940_v19 = vpop.f32.mrb[43].mxu0 }
 0xc70   :  { %v1567_v20 = vpop.f32.mrb[44].mxu0 }
 0xc71   :  { %v2951_v21 = vpop.f32.mrb[45].mxu0  ;;  %v1573_v22 = vsel %vm130_vm2, %v1567_v20, -inf }
 0xc72   :  { %1574 = vmax.xlane.f32.xlu0 %v1573_v22  ;;  %v1570_v24 = vpop.f32.mrb[46].mxu0 }
 0xc73   :  { %v2952_v27 = vpop.f32.mrb[47].mxu0 }
 0xc78   :  { %v1677_v29 = vpop.f32.mrb[48].mxu0 }
 0xc79   :  { %v2963_v30 = vpop.f32.mrb[49].mxu0  ;;  %v1683_v31 = vsel %vm130_vm2, %v1677_v29, -inf }
 0xc7a   :  { %1684 = vmax.xlane.f32.xlu0 %v1683_v31  ;;  %v1680_v32 = vpop.f32.mrb[50].mxu0 }
 0xc7b   :  { %v2964_v33 = vpop.f32.mrb[51].mxu0 }
 0xc80   :  { %v1787_v34 = vpop.f32.mrb[52].mxu0 }
 0xc81   :  { %v2975_v37 = vpop.f32.mrb[53].mxu0  ;;  %v1793_v9 = vsel %vm130_vm2, %v1787_v34, -inf }
 0xc82   :  { %1794 = vmax.xlane.f32.xlu1 %v1793_v9  ;;  %v1790_v39 = vpop.f32.mrb[54].mxu0 }
 0xc83   :  { %v2976_v40 = vpop.f32.mrb[55].mxu0 }
 0xc88   :  { %v1914_v42 = vpop.f32.mrb[56].mxu0 }
 0xc89   :  { %v2987_v43 = vpop.f32.mrb[57].mxu0  ;;  %v1920_v44 = vsel %vm130_vm2, %v1914_v42, -inf }
 0xc8a   :  { %1921 = vmax.xlane.f32.xlu0 %v1920_v44  ;;  %v1917_v46 = vpop.f32.mrb[58].mxu0 }
 0xc8b   :  { %v2988_v47 = vpop.f32.mrb[59].mxu0 }
 0xc90   :  { %v3725_v8 = vpop.f32.mrb[60].mxu0 }
 0xc91   :  { %v2999_v48 = vpop.f32.mrb[61].mxu0  ;;  %v2031_v50 = vsel %vm130_vm2, %v3725_v8, -inf }
 0xc92   :  { %2032 = vmax.xlane.f32.xlu1 %v2031_v50  ;;  %v2028_v51 = vpop.f32.mrb[62].mxu0 }
 0xc93   :  { %v3000_v53 = vpop.f32.mrb[63].mxu0 }
 0xc98   :  { %v2135_v55 = vpop.f32.mrb[64].mxu0 }
 0xc99   :  { %v3011_v16 = vpop.f32.mrb[65].mxu0  ;;  %v2141_v56 = vsel %vm130_vm2, %v2135_v55, -inf }
 0xc9a   :  { %2142 = vmax.xlane.f32.xlu0 %v2141_v56  ;;  %v2138_v57 = vpop.f32.mrb[66].mxu0 }
 0xc9b   :  { %v3012_v58 = vpop.f32.mrb[67].mxu0 }
 0xca0   :  { %v3730_v59 = vpop.f32.mrb[68].mxu0 }
 0xca1   :  { %v3023_v60 = vpop.f32.mrb[69].mxu0  ;;  %v2251_v63 = vsel %vm130_vm2, %v3730_v59, -inf }
 0xca2   :  { %v2248_v61 = vpop.f32.mrb[70].mxu0 }
 0xca3   :  { %1585 = vrot.lane.b32.xlu1 %v3654_v45, %s3268_s23  ;;  %v3024_v62 = vpop.f32.mrb[71].mxu0 }
 0xcb0   :  { %1474 = vrot.lane.b32.xlu0 %v3654_v45, %s3269_s24 }
 0xcc7   :  { %2252 = vmax.xlane.f32.xlu1 %v2251_v63 }
 0xcd8   :  { %1695 = vrot.lane.b32.xlu1 %v3654_v45, %s3270_s25 }
 0xcf7   :  { %v1464_v1 = vpop.xlane.xlu1 %1463 }
 0xcf8   :  { %v1465_v2 = vsub.f32 %v1456_v3, %v1464_v1 }
 0xcfa   :  { %v1466_v5 = vmul.f32 1.442695, %v1465_v2 }
 0xcfc   :  { %3168 = vpow2.f32 %v1466_v5 }
 0xcff   :  { %v1575_v6 = vpop.xlane.xlu0 %1574 }
 0xd00   :  { %v1576_v10 = vsub.f32 %v1567_v20, %v1575_v6 }
 0xd02   :  { %v1577_v11 = vmul.f32 1.442695, %v1576_v10 }
 0xd04   :  { %3170 = vpow2.f32 %v1577_v11 }
 0xd06   :  { %v3740_v12 = vpop.eup %3168 }
 0xd07   :  { %v1685_v13 = vpop.xlane.xlu0 %1684  ;;  %v1468_v14 = vsel %vm130_vm2, %v3740_v12, 0.0 }
 0xd08   :  { %v1686_v15 = vsub.f32 %v1677_v29, %v1685_v13  ;;  %1469 = vadd.xlane.f32.xlu0 %v1468_v14 }
 0xd0a   :  { %v1687_v4 = vmul.f32 1.442695, %v1686_v15 }
 0xd0c   :  { %3172 = vpow2.f32 %v1687_v4 }
 0xd0e   :  { %v3744_v17 = vpop.eup %3170 }
 0xd0f   :  { %v1795_v18 = vpop.xlane.xlu1 %1794  ;;  %v1579_v3 = vsel %vm130_vm2, %v3744_v17, 0.0 }
 0xd10   :  { %v1796_v19 = vsub.f32 %v1787_v34, %v1795_v18  ;;  %1580 = vadd.xlane.f32.xlu1 %v1579_v3 }
 0xd12   :  { %v1797_v20 = vmul.f32 1.442695, %v1796_v19 }
 0xd14   :  { %3174 = vpow2.f32 %v1797_v20 }
 0xd16   :  { %v3748_v21 = vpop.eup %3172 }
 0xd17   :  { %v1922_v22 = vpop.xlane.xlu0 %1921  ;;  %v1689_v24 = vsel %vm130_vm2, %v3748_v21, 0.0 }
 0xd18   :  { %v1923_v27 = vsub.f32 %v1914_v42, %v1922_v22  ;;  %1690 = vadd.xlane.f32.xlu0 %v1689_v24 }
 0xd1a   :  { %v1924_v29 = vmul.f32 1.442695, %v1923_v27 }
 0xd1c   :  { %3176 = vpow2.f32 %v1924_v29 }
 0xd1e   :  { %v3752_v30 = vpop.eup %3174 }
 0xd1f   :  { %v1799_v31 = vsel %vm130_vm2, %v3752_v30, 0.0  ;;  %v2033_v42 = vpop.xlane.xlu1 %2032 }
 0xd20   :  { %1800 = vadd.xlane.f32.xlu1 %v1799_v31  ;;  %v2034_v44 = vsub.f32 %v3725_v8, %v2033_v42 }
 0xd22   :  { %v2035_v47 = vmul.f32 1.442695, %v2034_v44 }
 0xd26   :  { %v3756_v32 = vpop.eup %3176 }
 0xd27   :  { %v2143_v33 = vpop.xlane.xlu0 %2142  ;;  %v1926_v34 = vsel %vm130_vm2, %v3756_v32, 0.0 }
 0xd28   :  { %v2144_v37 = vsub.f32 %v2135_v55, %v2143_v33  ;;  %1927 = vadd.xlane.f32.xlu1 %v1926_v34 }
 0xd2a   :  { %v2145_v9 = vmul.f32 1.442695, %v2144_v37 }
 0xd2b   :  { %v1475_v39 = vpop.permute.xlu0 %1474 }
 0xd2c   :  { %3178 = vpow2.f32 %v2145_v9  ;;  %v1480_v40 = vsel %vm194_vm3, %v1475_v39, 0 }
 0xd2d   :  { %2942 = vmatpush3.bf16.msra.mxu1 %v1480_v40  ;;  %3180 = vpow2.f32 %v2035_v47 }
 0xd2e   :  { %1805 = vrot.lane.b32.xlu0 %v3654_v45, %s3271_s26  ;;  %2953 = vmatprep.subr.bf16.mxu1 %v3259_v0  ;;  %v1586_v45 = vpop.permute.xlu1 %1585 }
 0xd2f   :  { %v1591_v62 = vsel %vm194_vm3, %v1586_v45, 0 }
 0xd36   :  { %v3764_v43 = vpop.eup %3178 }
 0xd37   :  { %v2147_v46 = vsel %vm130_vm2, %v3764_v43, 0.0  ;;  %v3769_v48 = vpop.eup %3180 }
 0xd38   :  { %2148 = vadd.xlane.f32.xlu1 %v2147_v46  ;;  %v2037_v50 = vsel %vm130_vm2, %v3769_v48, 0.0 }
 0xd4d   :  { %2038 = vadd.xlane.f32.xlu0 %v2037_v50 }
 0xd54   :  { %v2253_v51 = vpop.xlane.xlu1 %2252 }
 0xd55   :  { %v2254_v53 = vsub.f32 %v3730_v59, %v2253_v51 }
 0xd57   :  { %v2255_v55 = vmul.f32 1.442695, %v2254_v53 }
 0xd58   :  { %v1696_v57 = vpop.permute.xlu1 %1695 }
 0xd59   :  { %3182 = vpow2.f32 %v2255_v55  ;;  %v1701_v5 = vsel %vm194_vm3, %v1696_v57, 0 }
 0xd63   :  { %v3774_v16 = vpop.eup %3182  ;;  %2043 = vrot.lane.b32.xlu0 %v3666_v49, %s3268_s23 }
 0xd64   :  { %v2257_v8 = vsel %vm130_vm2, %v3774_v16, 0.0 }
 0xd65   :  { %2258 = vadd.xlane.f32.xlu1 %v2257_v8 }
 0xd67   :  { %2153 = vrot.lane.b32.xlu0 %v3666_v49, %s3270_s25 }
 0xd6b   :  { %2263 = vrot.lane.b32.xlu0 %v3666_v49, %s3271_s26 }
 0xd76   :  { %1932 = vrot.lane.b32.xlu1 %v3666_v49, %s3269_s24 }
 0xd95   :  { %v1470_v56 = vpop.xlane.xlu0 %1469 }
 0xd96   :  { %3184 = vrcp.f32 %v1470_v56 }
 0xd9d   :  { %v1581_v58 = vpop.xlane.xlu1 %1580 }
 0xd9e   :  { %3186 = vrcp.f32 %v1581_v58 }
 0xda0   :  { %v3185_v59 = vpop.eup %3184 }
 0xda1   :  { %v1472_v60 = vmul.f32 %v3185_v59, %v3740_v12 }
 0xda3   :  { %v1473_v61 = vpack.c.bf16 %v1472_v60, %v1472_v60 }
 0xda5   :  { %2944 = vmatmul.mubr.msk.bf16.vlgmr.msra.gmra.mrb[44].mxu1 %vm130_vm2, %v1473_v61  ;;  %v1691_v63 = vpop.xlane.xlu0 %1690 }
 0xda6   :  { %2954 = vmatpush3.bf16.msra.mxu1 %v1591_v62  ;;  %3188 = vrcp.f32 %v1691_v63  ;;  %2955 = vmatprep.mubr.msk.bf16.mxu1 %vm3260_vm0, %v3259_v0 }
 0xda7   :  { %2965 = vmatprep.subr.bf16.mxu1 %v3259_v0 }
 0xda8   :  { %v3187_v49 = vpop.eup %3186 }
 0xda9   :  { %v1583_v1 = vmul.f32 %v3187_v49, %v3744_v17  ;;  %v1806_v12 = vpop.permute.xlu0 %1805 }
 0xdaa   :  { %v1811_v14 = vsel %vm194_vm3, %v1806_v12, 0 }
 0xdab   :  { %v1584_v2 = vpack.c.bf16 %v1583_v1, %v1583_v1 }
 0xdad   :  { %2956 = vmatmul.mubr.msk.bf16.vlgmr.msra.gmra.mrb[48].mxu1 %vm130_vm2, %v1584_v2  ;;  %v1801_v6 = vpop.xlane.xlu1 %1800 }
 0xdae   :  { %2966 = vmatpush3.bf16.msra.mxu1 %v1701_v5  ;;  %3190 = vrcp.f32 %v1801_v6  ;;  %2967 = vmatprep.mubr.msk.bf16.mxu1 %vm3260_vm0, %v3259_v0 }
 0xdaf   :  { %2977 = vmatprep.subr.bf16.mxu1 %v3259_v0 }
 0xdb0   :  { %v3189_v10 = vpop.eup %3188 }
 0xdb1   :  { %v1693_v11 = vmul.f32 %v3189_v10, %v3748_v21 }
 0xdb3   :  { %v1694_v13 = vpack.c.bf16 %v1693_v11, %v1693_v11  ;;  %v3120_v11 = vld [vmem:[%s3926_s2 + $0x10] sm:$0xff]  }
 0xdb4   :  { %3032 = vmatpush3.bf16.msra.mxu0 %v3120_v11  ;;  %v3124_v11 = vld [vmem:[%s3928_s4 + $0x20] sm:$0xff]  }
 0xdb5   :  { %2968 = vmatmul.mubr.msk.bf16.vlgmr.msra.gmra.mrb[52].mxu1 %vm130_vm2, %v1694_v13  ;;  %v1928_v18 = vpop.xlane.xlu1 %1927  ;;  %3033 = vmatprep.subr.bf16.mxu0 %v3259_v0 }
 0xdb6   :  { %2978 = vmatpush3.bf16.msra.mxu1 %v1811_v14  ;;  %2979 = vmatprep.mubr.msk.bf16.mxu1 %vm3260_vm0, %v3259_v0  ;;  %3192 = vrcp.f32 %v1928_v18 }
 0xdb7   :  { %2989 = vmatprep.subr.bf16.mxu1 %v3259_v0 }
 0xdb8   :  { %v3191_v15 = vpop.eup %3190 }
 0xdb9   :  { %v1803_v4 = vmul.f32 %v3191_v15, %v3752_v30 }
 0xdbb   :  { %v1804_v17 = vpack.c.bf16 %v1803_v4, %v1803_v4  ;;  %v3121_v4 = vld [vmem:[%s3926_s2 + $0x18] sm:$0xff]  }
 0xdbc   :  { %3034 = vmatpush3.bf16.msra.mxu0 %v3121_v4 }
 0xdbd   :  { %2980 = vmatmul.mubr.msk.bf16.vlgmr.msra.gmra.mrb[56].mxu1 %vm130_vm2, %v1804_v17  ;;  %3047 = vmatprep.subr.bf16.mxu0 %v3259_v0 }
 0xdbe   :  { %2991 = vmatprep.mubr.msk.bf16.mxu1 %vm3260_vm0, %v3259_v0 }
 0xdc0   :  { %v3193_v20 = vpop.eup %3192 }
 0xdc1   :  { %v1930_v22 = vmul.f32 %v3193_v20, %v3756_v32 }
 0xdc3   :  { %v1931_v30 = vpack.c.bf16 %v1930_v22, %v1930_v22 }
 0xdc5   :  { %v2149_v19 = vpop.xlane.xlu1 %2148 }
 0xdda   :  { %v2039_v3 = vpop.xlane.xlu0 %2038 }
 0xddb   :  { %3194 = vrcp.f32 %v2039_v3 }
 0xddc   :  { %3196 = vrcp.f32 %v2149_v19 }
 0xdde   :  { %v2044_v29 = vpop.permute.xlu0 %2043 }
 0xddf   :  { %v2049_v33 = vsel %vm194_vm3, %v2044_v29, 0 }
 0xde2   :  { %v2154_v34 = vpop.permute.xlu0 %2153 }
 0xde3   :  { %v2159_v39 = vsel %vm194_vm3, %v2154_v34, 0 }
 0xde5   :  { %v3195_v31 = vpop.eup %3194 }
 0xde6   :  { %v2041_v32 = vmul.f32 %v3195_v31, %v3769_v48  ;;  %v3197_v9 = vpop.eup %3196  ;;  %v2264_v42 = vpop.permute.xlu0 %2263 }
 0xde7   :  { %v2151_v40 = vmul.f32 %v3197_v9, %v3764_v43  ;;  %v2269_v47 = vsel %vm194_vm3, %v2264_v42, 0 }
 0xde8   :  { %v2042_v37 = vpack.c.bf16 %v2041_v32, %v2041_v32 }
 0xde9   :  { %v2152_v44 = vpack.c.bf16 %v2151_v40, %v2151_v40 }
 0xdf2   :  { %v2259_v21 = vpop.xlane.xlu1 %2258 }
 0xdf3   :  { %3198 = vrcp.f32 %v2259_v21 }
 0xdf6   :  { %v1933_v24 = vpop.permute.xlu1 %1932 }
 0xdf7   :  { %v1938_v27 = vsel %vm194_vm3, %v1933_v24, 0 }
 0xdf8   :  { %2990 = vmatpush3.bf16.msra.mxu1 %v1938_v27 }
 0xdf9   :  { %3001 = vmatprep.subr.bf16.mxu1 %v3259_v0 }
 0xdfb   :  { %2992 = vmatmul.mubr.msk.bf16.vlgmr.msra.gmra.mrb[60].mxu1 %vm130_vm2, %v1931_v30 }
 0xdfc   :  { %3002 = vmatpush3.bf16.msra.mxu1 %v2049_v33  ;;  %3003 = vmatprep.mubr.msk.bf16.mxu1 %vm3260_vm0, %v3259_v0 }
 0xdfd   :  { %3013 = vmatprep.subr.bf16.mxu1 %v3259_v0  ;;  %v3199_v46 = vpop.eup %3198 }
 0xdfe   :  { %v2261_v48 = vmul.f32 %v3199_v46, %v3774_v16 }
 0xe00   :  { %v2262_v50 = vpack.c.bf16 %v2261_v48, %v2261_v48 }
 0xe03   :  { %3004 = vmatmul.mubr.msk.bf16.vlgmr.msra.gmra.mrb[64].mxu1 %vm130_vm2, %v2042_v37 }
 0xe04   :  { %3014 = vmatpush3.bf16.msra.mxu1 %v2159_v39  ;;  %3015 = vmatprep.mubr.msk.bf16.mxu1 %vm3260_vm0, %v3259_v0 }
 0xe05   :  { %3025 = vmatprep.subr.bf16.mxu1 %v3259_v0 }
 0xe0b   :  { %3016 = vmatmul.mubr.msk.bf16.vlgmr.msra.gmra.mrb[68].mxu1 %vm130_vm2, %v2152_v44 }
 0xe0c   :  { %3026 = vmatpush3.bf16.msra.mxu1 %v2269_v47  ;;  %3027 = vmatprep.mubr.msk.bf16.mxu1 %vm3260_vm0, %v3259_v0 }
 0xe0d   :  { %3039 = vmatprep.subr.bf16.mxu1 %v3259_v0 }
 0xe13   :  { %3028 = vmatmul.mubr.msk.bf16.vlgmr.msra.gmra.mrb[72].mxu1 %vm130_vm2, %v2262_v50 }
 0xe14   :  { %3043 = vmatprep.mubr.msk.bf16.mxu1 %vm3260_vm0, %v3259_v0 }
 0xe78   :  { %v1516_v43 = vpop.f32.mrb[44].mxu1 }
 0xe79   :  { %v2945_v45 = vpop.f32.mrb[45].mxu1 }
 0xe7a   :  { %v1519_v51 = vpop.f32.mrb[46].mxu1 }
 0xe7b   :  { %v2946_v53 = vpop.f32.mrb[47].mxu1 }
 0xe80   :  { %v1627_v55 = vpop.f32.mrb[48].mxu1 }
 0xe81   :  { %v2957_v8 = vpop.f32.mrb[49].mxu1 }
 0xe82   :  { %v1630_v56 = vpop.f32.mrb[50].mxu1 }
 0xe83   :  { %v2958_v57 = vpop.f32.mrb[51].mxu1 }
 0xe88   :  { %v1737_v58 = vpop.f32.mrb[52].mxu1 }
 0xe89   :  { %v2969_v59 = vpop.f32.mrb[53].mxu1 }
 0xe8a   :  { %v1740_v60 = vpop.f32.mrb[54].mxu1 }
 0xe8b   :  { %v2970_v16 = vpop.f32.mrb[55].mxu1 }
 0xe90   :  { %v1847_v61 = vpop.f32.mrb[56].mxu1 }
 0xe91   :  { %v2981_v62 = vpop.f32.mrb[57].mxu1 }
 0xe92   :  { %v1850_v63 = vpop.f32.mrb[58].mxu1 }
 0xe93   :  { %v2982_v49 = vpop.f32.mrb[59].mxu1 }
 0xece   :  { %v1974_v1 = vpop.f32.mrb[60].mxu1 }
 0xecf   :  { %v2993_v2 = vpop.f32.mrb[61].mxu1 }
 0xed0   :  { %v1977_v5 = vpop.f32.mrb[62].mxu1 }
 0xed1   :  { %v2994_v6 = vpop.f32.mrb[63].mxu1 }
 0xed6   :  { %v2085_v10 = vpop.f32.mrb[64].mxu1 }
 0xed7   :  { %v3093_v12 = vpack.i.bf16 %v2085_v10, %v1627_v55  ;;  %v3005_v13 = vpop.f32.mrb[65].mxu1  ;;  %v3123_v10 = vld [vmem:[%s3927_s3 + $0x18] sm:$0xff]  }
 0xed8   :  { %v2088_v14 = vpop.f32.mrb[66].mxu1 }
 0xed9   :  { %3094 = vrot.lane.b32.xlu1 %v3093_v12, %s3258_s8  ;;  %v3006_v15 = vpop.f32.mrb[67].mxu1  ;;  %v3125_v12 = vld [vmem:[%s3928_s4 + $0x28] sm:$0xff]  }
 0xede   :  { %v2195_v17 = vpop.f32.mrb[68].mxu1 }
 0xedf   :  { %v3098_v18 = vpack.i.bf16 %v2195_v17, %v1737_v58  ;;  %v3017_v3 = vpop.f32.mrb[69].mxu1 }
 0xee0   :  { %v2198_v19 = vpop.f32.mrb[70].mxu1 }
 0xee1   :  { %3099 = vrot.lane.b32.xlu0 %v3098_v18, %s3272_s9  ;;  %v3018_v20 = vpop.f32.mrb[71].mxu1  ;;  %v2418_v19 = vrot.slane %v3649_v38, %v1136_v26  ;;  %v3127_v26 = vld [vmem:[%s3928_s4 + $0x38] sm:$0xff]  }
 0xee6   :  { %v2305_v21 = vpop.f32.mrb[72].mxu1 }
 0xee7   :  { %v3103_v22 = vpack.i.bf16 %v2305_v21, %v1847_v61  ;;  %v3029_v24 = vpop.f32.mrb[73].mxu1 }
 0xee8   :  { %v2308_v27 = vpop.f32.mrb[74].mxu1 }
 0xee9   :  { %3104 = vrot.lane.b32.xlu1 %v3103_v22, %s3273_s10  ;;  %v3030_v29 = vpop.f32.mrb[75].mxu1  ;;  %v2424_v27 = vrot.slane %v3649_v38, %v1142_v28  ;;  %v2431_v28 = vrot.slane %v3649_v38, %v1149_v41 }
 0xf4b   :  { %v3095_v30 = vpop.permute.xlu1 %3094 }
 0xf4c   :  { %v3097_v33 = vunpack.i.h.bf16 %v3095_v30  ;;  %v3096_v32 = vunpack.i.l.bf16 %v3095_v30 }
 0xf4e   :  { %v2323_v39 = vsel %vm130_vm2, %v1974_v1, %v3097_v33  ;;  %v1865_v40 = vsel %vm130_vm2, %v1516_v43, %v3096_v32  ;;  %v2330_v43 = vrot.slane %v3649_v38, %v1047_v54  ;;  %v3126_v32 = vld [vmem:[%s3928_s4 + $0x30] sm:$0xff]   ;;  %s3274_s4 = smov [#allocation5]  }
 0xf4f   :  { %s2610_s28 = sshll.u32 %s3274_s4, 4  ;;  %s2611_s28 = int_to_ptr.vmem [resolvable:$true] %s2610_s28 }
 0xf50   :  { %s3230_s29 = scalar_lea.vmem %s2611_s28, 256  ;;  %p3235_p9 = scmp.lt.s32.totalorder %s2611_s28, %s2611_s28 }
 0xf51   :  { %p3231_p8 = scmp.ne.s32.totalorder %s2611_s28, %s3230_s29  ;;  %p3236_p10 = scmp.lt.s32.totalorder %s3230_s29, %s3230_s29 }
 0xf53   :  { %v3100_v31 = vpop.permute.xlu0 %3099  ;;  %p3237_p11 = por %p3236_p10, %p3235_p9 }
 0xf54   :  { %v3102_v34 = vunpack.i.h.bf16 %v3100_v31  ;;  %v3101_v37 = vunpack.i.l.bf16 %v3100_v31 }
 0xf55   :  { %p3238_p12 = pnand %p3237_p11, %p3231_p8 }
 0xf56   :  { %v2324_v46 = vsel %vm582_vm4, %v2323_v39, %v3102_v34  ;;  %v1866_v47 = vsel %vm582_vm4, %v1865_v40, %v3101_v37 }
 0xf5b   :  { %v3105_v9 = vpop.permute.xlu1 %3104 }
 0xf5c   :  { %v3107_v42 = vunpack.i.h.bf16 %v3105_v9  ;;  %v3106_v44 = vunpack.i.l.bf16 %v3105_v9 }
 0xf5e   :  { %v2325_v48 = vsel %vm584_vm5, %v2324_v46, %v3107_v42  ;;  %v1867_v50 = vsel %vm584_vm5, %v1866_v47, %v3106_v44 }
 0xf5f   :  { %v2326_v45 = vpack.c.bf16 %v2325_v48, %v1867_v50 }
 0xf61   :  { %3036 = vmatmul.mubr.msk.bf16.vlgmr.msra.gmra.mrb[72].mxu0 %vm79_vm1, %v2326_v45 }
 0xf62   :  { %3055 = vmatprep.mubr.msk.bf16.mxu0 %vm3260_vm0, %v3259_v0  ;;  %3048 = vmatpush3.bf16.msra.mxu0 %v3124_v11 }
 0xf63   :  { %3049 = vmatprep.subr.bf16.mxu0 %v3259_v0 }
 0xf66   :  { %3050 = vmatpush3.bf16.msra.mxu0 %v3125_v12  ;;  %v2600_v12 = vrot.slane %v3649_v38, %v1319_v25 }
 0xf67   :  { %3051 = vmatprep.subr.bf16.mxu0 %v3259_v0 }
 0xf6a   :  { %3052 = vmatpush3.bf16.msra.mxu0 %v3126_v32 }
 0xf6b   :  { %3053 = vmatprep.subr.bf16.mxu0 %v3259_v0 }
 0xf6e   :  { %3054 = vmatpush3.bf16.msra.mxu0 %v3127_v26 }
0x1034   :  { %v2380_v51 = vpop.f32.mrb[72].mxu0 }
0x1035   :  { %v2381_v53 = vadd.f32 %v2380_v51, %v2330_v43  ;;  %v3037_v55 = vpop.f32.mrb[73].mxu0 }
0x1036   :  { %v2383_v8 = vpop.f32.mrb[74].mxu0 }
0x1037   :  { %v2384_v56 = vadd.f32 %v2383_v8, %v2330_v43  ;;  %v3038_v57 = vpop.f32.mrb[75].mxu0  ;;  %v2387_v58 = vadd.f32 %v2381_v53, %v3637_v35 }
0x1039   :  { %v2389_v59 = vsel %vm79_vm1, %v2387_v58, 0.0  ;;  %v2388_v60 = vadd.f32 %v2384_v56, %v3639_v36  ;;  %v3122_v36 = vld [vmem:[%s3927_s3 + $0x10] sm:$0xff]  }
0x103a   :  { %2390 = vadd.xlane.f32.xlu0 %v2389_v59  ;;  %3040 = vmatpush3.bf16.msra.mxu1 %v3122_v36  ;;  %v2594_v36 = vrot.slane %v3649_v38, %v1313_v23 }
0x103b   :  { %v2392_v16 = vsel %vm79_vm1, %v2388_v60, 0.0  ;;  %3041 = vmatprep.subr.bf16.mxu1 %v3259_v0  ;;  %v2494_v0 = vrot.slane %v3649_v38, %v1212_v52 }
0x103c   :  { %2393 = vadd.xlane.f32.xlu1 %v2392_v16 }
0x103e   :  { %3042 = vmatpush3.bf16.msra.mxu1 %v3123_v10 }
0x10c7   :  { %v2391_v61 = vpop.xlane.xlu0 %2390 }
0x10c8   :  { %v2395_v62 = vmul.f32 0.03125, %v2391_v61 }
0x10c9   :  { %v2394_v63 = vpop.xlane.xlu1 %2393 }
0x10ca   :  { %v2397_v54 = vsub.f32 %v2387_v58, %v2395_v62  ;;  %v2396_v49 = vmul.f32 0.03125, %v2394_v63 }
0x10cc   :  { %v2398_v1 = vsub.f32 %v2388_v60, %v2396_v49  ;;  %v2399_v2 = vmul.f32 %v2397_v54, %v2397_v54 }
0x10ce   :  { %v2401_v5 = vsel %vm79_vm1, %v2399_v2, 0.0  ;;  %v2400_v6 = vmul.f32 %v2398_v1, %v2398_v1 }
0x10cf   :  { %2402 = vadd.xlane.f32.xlu0 %v2401_v5 }
0x10d0   :  { %v2404_v35 = vsel %vm79_vm1, %v2400_v6, 0.0 }
0x10d3   :  { %2405 = vadd.xlane.f32.xlu0 %v2404_v35 }
0x115c   :  { %v2403_v13 = vpop.xlane.xlu0 %2402 }
0x115d   :  { %v2407_v14 = vmul.f32 0.03125, %v2403_v13 }
0x115f   :  { %v2409_v15 = vadd.f32 1e-05, %v2407_v14 }
0x1160   :  { %v2406_v4 = vpop.xlane.xlu0 %2405 }
0x1161   :  { %3200 = vrsqrt.f32 %v2409_v15  ;;  %v2408_v17 = vmul.f32 0.03125, %v2406_v4 }
0x1163   :  { %v2410_v18 = vadd.f32 1e-05, %v2408_v17 }
0x1165   :  { %3202 = vrsqrt.f32 %v2410_v18 }
0x116b   :  { %v3201_v3 = vpop.eup %3200 }
0x116c   :  { %v2413_v20 = vmul.f32 %v3201_v3, %v2397_v54 }
0x116e   :  { %v2419_v22 = vmul.f32 %v2418_v19, %v2413_v20 }
0x116f   :  { %v3203_v21 = vpop.eup %3202 }
0x1170   :  { %v2414_v24 = vmul.f32 %v3203_v21, %v2398_v1  ;;  %v2425_v30 = vadd.f32 %v2424_v27, %v2419_v22 }
0x1172   :  { %v2420_v29 = vmul.f32 %v2418_v19, %v2414_v24 }
0x1174   :  { %v2426_v31 = vadd.f32 %v2424_v27, %v2420_v29 }
0x1176   :  { %v2427_v33 = vpack.c.bf16 %v2426_v31, %v2425_v30 }
0x1178   :  { %3044 = vmatmul.mubr.msk.bf16.vlgmr.msra.gmra.mrb[76].mxu1 %vm79_vm1, %v2427_v33 }
0x124b   :  { %v2481_v34 = vpop.f32.mrb[76].mxu1 }
0x124c   :  { %v2482_v37 = vadd.f32 %v2481_v34, %v2431_v28  ;;  %v3045_v9 = vpop.f32.mrb[77].mxu1 }
0x124d   :  { %v2484_v39 = vpop.f32.mrb[78].mxu1 }
0x124e   :  { %v2485_v40 = vadd.f32 %v2484_v39, %v2431_v28  ;;  %v3046_v42 = vpop.f32.mrb[79].mxu1  ;;  %v2488_v44 = vmax.f32 %v2482_v37, 0.0 }
0x1250   :  { %v2489_v46 = vmax.f32 %v2485_v40, 0.0 }
0x1252   :  { %v2490_v47 = vpack.c.bf16 %v2489_v46, %v2488_v44 }
0x1254   :  { %3056 = vmatmul.mubr.msk.bf16.vlgmr.msra.gmra.mrb[76].mxu0 %vm1238_vm6, %v2490_v47 }
0x1327   :  { %v2556_v48 = vpop.f32.mrb[76].mxu0 }
0x1328   :  { %v2557_v50 = vadd.f32 %v2556_v48, %v2494_v0  ;;  %v3057_v45 = vpop.f32.mrb[77].mxu0 }
0x1329   :  { %v2559_v43 = vpop.f32.mrb[78].mxu0 }
0x132a   :  { %v2560_v41 = vadd.f32 %v2559_v43, %v2494_v0  ;;  %v3058_v51 = vpop.f32.mrb[79].mxu0  ;;  %v2563_v53 = vadd.f32 %v2557_v50, %v2425_v30 }
0x132c   :  { %v2565_v55 = vsel %vm79_vm1, %v2563_v53, 0.0  ;;  %v2564_v8 = vadd.f32 %v2560_v41, %v2426_v31 }
0x132d   :  { %2566 = vadd.xlane.f32.xlu1 %v2565_v55 }
0x132e   :  { %v2568_v56 = vsel %vm79_vm1, %v2564_v8, 0.0 }
0x132f   :  { %2569 = vadd.xlane.f32.xlu0 %v2568_v56 }
0x13ba   :  { %v2567_v57 = vpop.xlane.xlu1 %2566 }
0x13bb   :  { %v2571_v58 = vmul.f32 0.03125, %v2567_v57 }
0x13bc   :  { %v2570_v59 = vpop.xlane.xlu0 %2569 }
0x13bd   :  { %v2573_v60 = vsub.f32 %v2563_v53, %v2571_v58  ;;  %v2572_v16 = vmul.f32 0.03125, %v2570_v59 }
0x13bf   :  { %v2574_v52 = vsub.f32 %v2564_v8, %v2572_v16  ;;  %v2575_v61 = vmul.f32 %v2573_v60, %v2573_v60 }
0x13c1   :  { %v2577_v62 = vsel %vm79_vm1, %v2575_v61, 0.0  ;;  %v2576_v63 = vmul.f32 %v2574_v52, %v2574_v52 }
0x13c2   :  { %2578 = vadd.xlane.f32.xlu1 %v2577_v62 }
0x13c3   :  { %v2580_v54 = vsel %vm79_vm1, %v2576_v63, 0.0 }
0x13c4   :  { %2581 = vadd.xlane.f32.xlu0 %v2580_v54 }
0x144f   :  { %v2579_v49 = vpop.xlane.xlu1 %2578 }
0x1450   :  { %v2583_v1 = vmul.f32 0.03125, %v2579_v49 }
0x1451   :  { %v2582_v2 = vpop.xlane.xlu0 %2581 }
0x1452   :  { %v2585_v5 = vadd.f32 1e-05, %v2583_v1  ;;  %v2584_v6 = vmul.f32 0.03125, %v2582_v2 }
0x1454   :  { %3204 = vrsqrt.f32 %v2585_v5  ;;  %v2586_v35 = vadd.f32 1e-05, %v2584_v6 }
0x1456   :  { %3206 = vrsqrt.f32 %v2586_v35 }
0x145e   :  { %v3205_v10 = vpop.eup %3204 }
0x145f   :  { %v2589_v11 = vmul.f32 %v3205_v10, %v2573_v60 }
0x1460   :  { %v3207_v13 = vpop.eup %3206 }
0x1461   :  { %v2590_v14 = vmul.f32 %v3207_v13, %v2574_v52  ;;  %v2595_v15 = vmul.f32 %v2594_v36, %v2589_v11 }
0x1463   :  { %v2596_v4 = vmul.f32 %v2594_v36, %v2590_v14  ;;  %v2601_v17 = vadd.f32 %v2600_v12, %v2595_v15 }
0x1465   :  { %v2602_v18 = vadd.f32 %v2600_v12, %v2596_v4  ;;  %2603 = vst.msk [vmem:[#allocation5] sm:$0xff] %vm79_vm1, %v2601_v17 }
0x1467   :  { %2604 = vst.msk [vmem:[#allocation5 + $0x8] sm:$0xff] %vm79_vm1, %v2602_v18 }
0x1468   :  { %3241 = shalt.err (!%p3238_p12)
}
0x1469   :  { %s3242_s12 = scalar_lea.hbm %s3930_s6, 256 }
0x146a   :  { %p3243_p13 = scmp.ne.s32.totalorder %s3930_s6, %s3242_s12  ;;  %p3246_p0 = scmp.lt.u32.totalorder %s3242_s12, %s3930_s6 }
0x146c   :  { %p3248_p1 = pnand %p3246_p0, %p3243_p13 }
0x146e   :  { %3251 = shalt.err (!%p3248_p1)
}
0x146f   :  { %2616 = dma.vmem_to_hbm [thread:$0]  %s2611_s28, 256, %s3930_s6, [#allocation4], %s3257_s7, %s3257_s7, %s3258_s8  }
0x1470   :  { %3254 = dma.done.wait [#allocation4], 256  }
0x1471   :  { %3255 = vsyncadd [#allocation4], 4294967040 }
0x1472   :  { %2620 = vsyncpa [#allocation3], 1 }
0x1473   :  { %2621 = vsyncpa [#allocation4], 1 }

</bundles_post_ra>
